<compile_context>
chip_gen: v5e
topology: v5e:2x2
jax: 0.10.0
libtpu: 0.0.40
codegen_flags: <defaults>
</compile_context>

<pallas_src>
import functools

import jax
import jax.numpy as jnp
from jax.experimental import pallas as pl
from jax.experimental.pallas import tpu as pltpu


def make_receiver_kernel(vocab_size: int, max_length: int):
    lv = vocab_size * max_length

    def kernel(tok_ref, w1_ref, b1_ref, w2_ref, b2_ref, out_ref):
        tok = tok_ref[...]                                   # (TB, L) int32
        tb = tok.shape[0]

        # Build the full (TB, L*V) one-hot lane-dense, with the iota hoisted
        # (computed once per tile).  Column c = l*V + v is 1 iff tok[:, l] == v.
        col = jax.lax.broadcasted_iota(jnp.int32, (tb, lv), 1)
        onehot = jnp.zeros((tb, lv), jnp.float32)
        for l in range(max_length):                          # static, tiny VPU loop
            onehot = onehot + (
                tok[:, l:l + 1] + (l * vocab_size) == col
            ).astype(jnp.float32)

        # fc_1: single well-shaped MXU matmul, bias added once (broadcasts).
        h = jnp.dot(onehot, w1_ref[...],
                    preferred_element_type=jnp.float32) + b1_ref[...]

        # leaky_relu (PyTorch default negative_slope = 0.01)
        h = jnp.where(h > 0, h, 0.01 * h)

        # fc_2
        out = jnp.dot(h, w2_ref[...],
                      preferred_element_type=jnp.float32) + b2_ref[...]
        out_ref[...] = out.astype(out_ref.dtype)

    return kernel


def nonlinear_receiver_forward(x_tok, w1, b1, w2, b2, *,
                               vocab_size, max_length, tile_b=128):
    """x_tok: (B, L) int32. w1: (L*V, H), b1: (1, H), w2: (H, O), b2: (1, O)."""
    B = x_tok.shape[0]
    n_hidden = w1.shape[1]
    n_outputs = w2.shape[1]
    lv = vocab_size * max_length

    # Pad the batch to a multiple of the tile so the grid covers it exactly.
    padded_b = int(pl.cdiv(B, tile_b)) * tile_b
    if padded_b != B:
        x_tok = jnp.pad(x_tok, ((0, padded_b - B), (0, 0)))
    grid = (padded_b // tile_b,)

    kernel = make_receiver_kernel(vocab_size, max_length)
    out = pl.pallas_call(
        kernel,
        out_shape=jax.ShapeDtypeStruct((padded_b, n_outputs), jnp.float32),
        grid=grid,
        in_specs=[
            pl.BlockSpec((tile_b, max_length), lambda i: (i, 0)),   # tokens: tiled on batch
            pl.BlockSpec((lv, n_hidden), lambda i: (0, 0)),         # w1: resident
            pl.BlockSpec((1, n_hidden), lambda i: (0, 0)),          # b1: resident
            pl.BlockSpec((n_hidden, n_outputs), lambda i: (0, 0)),  # w2: resident
            pl.BlockSpec((1, n_outputs), lambda i: (0, 0)),         # b2: resident
        ],
        out_specs=pl.BlockSpec((tile_b, n_outputs), lambda i: (i, 0)),
        compiler_params=pltpu.CompilerParams(
            dimension_semantics=("parallel",)),                     # v7x: shard batch over 2 TCs
    )(x_tok, w1, b1, w2, b2)

    out = out[:B]
    zeros = jnp.zeros((B,), dtype=out.dtype)  # matches torch.zeros(x.size(0))
    return out, zeros, zeros


if __name__ == "__main__":
    # Small shapes consistent with the module's forward.
    batch = 200            # not a multiple of the tile -> exercises padding + 2 grid steps
    vocab_size = 16
    max_length = 8         # L*V = 128 == one lane width
    n_hidden = 64
    n_outputs = 16
    tile_b = 128

    key = jax.random.PRNGKey(0)
    k_tok, k_w1, k_b1, k_w2, k_b2 = jax.random.split(key, 5)

    # deterministic synthetic parameters (Linear weights stored as (in, out))
    in1 = vocab_size * max_length
    w1 = jax.random.normal(k_w1, (in1, n_hidden), jnp.float32) * (1.0 / jnp.sqrt(in1))
    b1 = jax.random.normal(k_b1, (1, n_hidden), jnp.float32) * 0.01
    w2 = jax.random.normal(k_w2, (n_hidden, n_outputs), jnp.float32) * (1.0 / jnp.sqrt(n_hidden))
    b2 = jax.random.normal(k_b2, (1, n_outputs), jnp.float32) * 0.01

    # integer message tokens
    x_tok = jax.random.randint(k_tok, (batch, max_length), 0, vocab_size, dtype=jnp.int32)

    fwd = functools.partial(nonlinear_receiver_forward,
                            vocab_size=vocab_size, max_length=max_length,
                            tile_b=tile_b)
    out, z1, z2 = fwd(x_tok, w1, b1, w2, b2)
    jax.block_until_ready(out)
    jax.block_until_ready(z1)
    jax.block_until_ready(z2)

    # pure-JAX reference check (frozen forward -> numerics must match exactly-ish)
    onehot = jax.nn.one_hot(x_tok, vocab_size, dtype=jnp.float32).reshape(batch, -1)
    ref = onehot @ w1 + b1
    ref = jnp.where(ref > 0, ref, 0.01 * ref)
    ref = ref @ w2 + b2
    assert jnp.allclose(out, ref, atol=1e-5, rtol=1e-5), "mismatch vs reference"
    assert out.shape == (batch, n_outputs) and z1.shape == (batch,) and z2.shape == (batch,)

    # TODO(synk): Freezer's no_grad() / train()-override has no Pallas analogue
    # (forward-only kernel, no autograd state); only the wrapped forward is implemented.
    print("KERNEL_OK")
</pallas_src>

<mosaic_0001>
module attributes {stable_mosaic.version = 11 : i64} {
  func.func @kernel(%arg0: i32, %arg1: memref<128x8xi32, #tpu.memory_space<vmem>>, %arg2: memref<128x64xf32, #tpu.memory_space<vmem>>, %arg3: memref<1x64xf32, #tpu.memory_space<vmem>>, %arg4: memref<64x16xf32, #tpu.memory_space<vmem>>, %arg5: memref<1x16xf32, #tpu.memory_space<vmem>>, %arg6: memref<128x16xf32, #tpu.memory_space<vmem>>) attributes {dimension_semantics = [#tpu.dimension_semantics<parallel>], iteration_bounds = array<i64: 2>, scalar_prefetch = 0 : i64, scratch_operands = 0 : i64, tpu.core_type = #tpu.core_type<tc>, window_params = [{transform_indices = @transform_0, window_bounds = array<i64: 128, 8>}, {pipeline_mode = #tpu.pipeline_mode<synchronous>, transform_indices = @transform_1, window_bounds = array<i64: 128, 64>}, {pipeline_mode = #tpu.pipeline_mode<synchronous>, transform_indices = @transform_2, window_bounds = array<i64: 1, 64>}, {pipeline_mode = #tpu.pipeline_mode<synchronous>, transform_indices = @transform_3, window_bounds = array<i64: 64, 16>}, {pipeline_mode = #tpu.pipeline_mode<synchronous>, transform_indices = @transform_4, window_bounds = array<i64: 1, 16>}, {transform_indices = @transform_5, window_bounds = array<i64: 128, 16>}]} {
    %c0 = arith.constant 0 : index
    %c0_0 = arith.constant 0 : index
    %0 = vector.load %arg1[%c0, %c0_0] : memref<128x8xi32, #tpu.memory_space<vmem>>, vector<128x8xi32>
    %1 = tpu.iota {dimensions = array<i32: 1>} : vector<128x128xi32>
    %cst = arith.constant 0.000000e+00 : f32
    %2 = vector.broadcast %cst : f32 to vector<128x128xf32>
    %3 = vector.extract_strided_slice %0 {offsets = [0, 0], sizes = [128, 1], strides = [1, 1]} : vector<128x8xi32> to vector<128x1xi32>
    %c0_i32 = arith.constant 0 : i32
    %4 = vector.broadcast %c0_i32 : i32 to vector<128x1xi32>
    %5 = arith.addi %3, %4 : vector<128x1xi32>
    %6 = vector.broadcast %5 : vector<128x1xi32> to vector<128x128xi32>
    %7 = arith.cmpi eq, %6, %1 : vector<128x128xi32>
    %8 = arith.extui %7 : vector<128x128xi1> to vector<128x128xi32>
    %9 = arith.sitofp %8 : vector<128x128xi32> to vector<128x128xf32>
    %10 = arith.addf %2, %9 : vector<128x128xf32>
    %11 = vector.extract_strided_slice %0 {offsets = [0, 1], sizes = [128, 1], strides = [1, 1]} : vector<128x8xi32> to vector<128x1xi32>
    %c16_i32 = arith.constant 16 : i32
    %12 = vector.broadcast %c16_i32 : i32 to vector<128x1xi32>
    %13 = arith.addi %11, %12 : vector<128x1xi32>
    %14 = vector.broadcast %13 : vector<128x1xi32> to vector<128x128xi32>
    %15 = arith.cmpi eq, %14, %1 : vector<128x128xi32>
    %16 = arith.extui %15 : vector<128x128xi1> to vector<128x128xi32>
    %17 = arith.sitofp %16 : vector<128x128xi32> to vector<128x128xf32>
    %18 = arith.addf %10, %17 : vector<128x128xf32>
    %19 = vector.extract_strided_slice %0 {offsets = [0, 2], sizes = [128, 1], strides = [1, 1]} : vector<128x8xi32> to vector<128x1xi32>
    %c32_i32 = arith.constant 32 : i32
    %20 = vector.broadcast %c32_i32 : i32 to vector<128x1xi32>
    %21 = arith.addi %19, %20 : vector<128x1xi32>
    %22 = vector.broadcast %21 : vector<128x1xi32> to vector<128x128xi32>
    %23 = arith.cmpi eq, %22, %1 : vector<128x128xi32>
    %24 = arith.extui %23 : vector<128x128xi1> to vector<128x128xi32>
    %25 = arith.sitofp %24 : vector<128x128xi32> to vector<128x128xf32>
    %26 = arith.addf %18, %25 : vector<128x128xf32>
    %27 = vector.extract_strided_slice %0 {offsets = [0, 3], sizes = [128, 1], strides = [1, 1]} : vector<128x8xi32> to vector<128x1xi32>
    %c48_i32 = arith.constant 48 : i32
    %28 = vector.broadcast %c48_i32 : i32 to vector<128x1xi32>
    %29 = arith.addi %27, %28 : vector<128x1xi32>
    %30 = vector.broadcast %29 : vector<128x1xi32> to vector<128x128xi32>
    %31 = arith.cmpi eq, %30, %1 : vector<128x128xi32>
    %32 = arith.extui %31 : vector<128x128xi1> to vector<128x128xi32>
    %33 = arith.sitofp %32 : vector<128x128xi32> to vector<128x128xf32>
    %34 = arith.addf %26, %33 : vector<128x128xf32>
    %35 = vector.extract_strided_slice %0 {offsets = [0, 4], sizes = [128, 1], strides = [1, 1]} : vector<128x8xi32> to vector<128x1xi32>
    %c64_i32 = arith.constant 64 : i32
    %36 = vector.broadcast %c64_i32 : i32 to vector<128x1xi32>
    %37 = arith.addi %35, %36 : vector<128x1xi32>
    %38 = vector.broadcast %37 : vector<128x1xi32> to vector<128x128xi32>
    %39 = arith.cmpi eq, %38, %1 : vector<128x128xi32>
    %40 = arith.extui %39 : vector<128x128xi1> to vector<128x128xi32>
    %41 = arith.sitofp %40 : vector<128x128xi32> to vector<128x128xf32>
    %42 = arith.addf %34, %41 : vector<128x128xf32>
    %43 = vector.extract_strided_slice %0 {offsets = [0, 5], sizes = [128, 1], strides = [1, 1]} : vector<128x8xi32> to vector<128x1xi32>
    %c80_i32 = arith.constant 80 : i32
    %44 = vector.broadcast %c80_i32 : i32 to vector<128x1xi32>
    %45 = arith.addi %43, %44 : vector<128x1xi32>
    %46 = vector.broadcast %45 : vector<128x1xi32> to vector<128x128xi32>
    %47 = arith.cmpi eq, %46, %1 : vector<128x128xi32>
    %48 = arith.extui %47 : vector<128x128xi1> to vector<128x128xi32>
    %49 = arith.sitofp %48 : vector<128x128xi32> to vector<128x128xf32>
    %50 = arith.addf %42, %49 : vector<128x128xf32>
    %51 = vector.extract_strided_slice %0 {offsets = [0, 6], sizes = [128, 1], strides = [1, 1]} : vector<128x8xi32> to vector<128x1xi32>
    %c96_i32 = arith.constant 96 : i32
    %52 = vector.broadcast %c96_i32 : i32 to vector<128x1xi32>
    %53 = arith.addi %51, %52 : vector<128x1xi32>
    %54 = vector.broadcast %53 : vector<128x1xi32> to vector<128x128xi32>
    %55 = arith.cmpi eq, %54, %1 : vector<128x128xi32>
    %56 = arith.extui %55 : vector<128x128xi1> to vector<128x128xi32>
    %57 = arith.sitofp %56 : vector<128x128xi32> to vector<128x128xf32>
    %58 = arith.addf %50, %57 : vector<128x128xf32>
    %59 = vector.extract_strided_slice %0 {offsets = [0, 7], sizes = [128, 1], strides = [1, 1]} : vector<128x8xi32> to vector<128x1xi32>
    %c112_i32 = arith.constant 112 : i32
    %60 = vector.broadcast %c112_i32 : i32 to vector<128x1xi32>
    %61 = arith.addi %59, %60 : vector<128x1xi32>
    %62 = vector.broadcast %61 : vector<128x1xi32> to vector<128x128xi32>
    %63 = arith.cmpi eq, %62, %1 : vector<128x128xi32>
    %64 = arith.extui %63 : vector<128x128xi1> to vector<128x128xi32>
    %65 = arith.sitofp %64 : vector<128x128xi32> to vector<128x128xf32>
    %66 = arith.addf %58, %65 : vector<128x128xf32>
    %c0_1 = arith.constant 0 : index
    %c0_2 = arith.constant 0 : index
    %67 = vector.load %arg2[%c0_1, %c0_2] : memref<128x64xf32, #tpu.memory_space<vmem>>, vector<128x64xf32>
    %cst_3 = arith.constant dense<0.000000e+00> : vector<128x64xf32>
    %68 = tpu.matmul %66, %67, %cst_3 {dimension_numbers = #tpu.dot_dimension_numbers<[1], [0], [0], [1], [0, 0, 1, 1], [], []>} : vector<128x128xf32>, vector<128x64xf32>, vector<128x64xf32> -> vector<128x64xf32>
    %c0_4 = arith.constant 0 : index
    %c0_5 = arith.constant 0 : index
    %69 = vector.load %arg3[%c0_4, %c0_5] : memref<1x64xf32, #tpu.memory_space<vmem>>, vector<1x64xf32>
    %70 = vector.broadcast %69 : vector<1x64xf32> to vector<128x64xf32>
    %71 = arith.addf %68, %70 : vector<128x64xf32>
    %cst_6 = arith.constant 0.000000e+00 : f32
    %72 = vector.broadcast %cst_6 : f32 to vector<128x64xf32>
    %73 = arith.cmpf ogt, %71, %72 : vector<128x64xf32>
    %cst_7 = arith.constant 0.00999999977 : f32
    %74 = vector.broadcast %cst_7 : f32 to vector<128x64xf32>
    %75 = arith.mulf %74, %71 : vector<128x64xf32>
    %76 = arith.select %73, %71, %75 : vector<128x64xi1>, vector<128x64xf32>
    %c0_8 = arith.constant 0 : index
    %c0_9 = arith.constant 0 : index
    %77 = vector.load %arg4[%c0_8, %c0_9] : memref<64x16xf32, #tpu.memory_space<vmem>>, vector<64x16xf32>
    %cst_10 = arith.constant dense<0.000000e+00> : vector<128x16xf32>
    %78 = tpu.matmul %76, %77, %cst_10 {dimension_numbers = #tpu.dot_dimension_numbers<[1], [0], [0], [1], [0, 0, 1, 1], [], []>} : vector<128x64xf32>, vector<64x16xf32>, vector<128x16xf32> -> vector<128x16xf32>
    %c0_11 = arith.constant 0 : index
    %c0_12 = arith.constant 0 : index
    %79 = vector.load %arg5[%c0_11, %c0_12] : memref<1x16xf32, #tpu.memory_space<vmem>>, vector<1x16xf32>
    %80 = vector.broadcast %79 : vector<1x16xf32> to vector<128x16xf32>
    %81 = arith.addf %78, %80 : vector<128x16xf32>
    %c0_13 = arith.constant 0 : index
    %c0_14 = arith.constant 0 : index
    %82 = vector.load %arg6[%c0_13, %c0_14] : memref<128x16xf32, #tpu.memory_space<vmem>>, vector<128x16xf32>
    tpu.vector_store %arg6[%c0_13, %c0_14], %81 {strides = array<i32>} : memref<128x16xf32, #tpu.memory_space<vmem>>, vector<128x16xf32>,
    return
  }
  func.func @transform_0(%arg0: i32) -> (i32, i32) {
    %c0_i32 = arith.constant 0 : i32
    %c0_i32_0 = arith.constant 0 : i32
    return %arg0, %c0_i32 : i32, i32
  }
  func.func @transform_1(%arg0: i32) -> (i32, i32) {
    %c0_i32 = arith.constant 0 : i32
    %c0_i32_0 = arith.constant 0 : i32
    %c0_i32_1 = arith.constant 0 : i32
    return %c0_i32, %c0_i32_0 : i32, i32
  }
  func.func @transform_2(%arg0: i32) -> (i32, i32) {
    %c0_i32 = arith.constant 0 : i32
    %c0_i32_0 = arith.constant 0 : i32
    %c0_i32_1 = arith.constant 0 : i32
    return %c0_i32, %c0_i32_0 : i32, i32
  }
  func.func @transform_3(%arg0: i32) -> (i32, i32) {
    %c0_i32 = arith.constant 0 : i32
    %c0_i32_0 = arith.constant 0 : i32
    %c0_i32_1 = arith.constant 0 : i32
    return %c0_i32, %c0_i32_0 : i32, i32
  }
  func.func @transform_4(%arg0: i32) -> (i32, i32) {
    %c0_i32 = arith.constant 0 : i32
    %c0_i32_0 = arith.constant 0 : i32
    %c0_i32_1 = arith.constant 0 : i32
    return %c0_i32, %c0_i32_0 : i32, i32
  }
  func.func @transform_5(%arg0: i32) -> (i32, i32) {
    %c0_i32 = arith.constant 0 : i32
    %c0_i32_0 = arith.constant 0 : i32
    return %arg0, %c0_i32 : i32, i32
  }
}

</mosaic_0001>

<bundles_post_ra>
// kernel: tpu_custom_call.1
= control target key start
LH: loop header
LB: loop body
LE: loop exit
PB: predicated region body
PF: predicated region fallthrough
CT: control target
= control target key end

     0   :  { %s1907_s18 = smov 0   ;;  %s2777_s0 = inlined_call_operand.vmem [shape: s32[256,8], index: 0, kind: input, shape index: {}]   ;;  %s2778_s1 = inlined_call_operand.vmem [shape: f32[128,64], index: 1, kind: input, shape index: {}]   ;;  %s2779_s2 = inlined_call_operand.vmem [shape: f32[1,64], index: 2, kind: input, shape index: {}]   ;;  %s2780_s3 = inlined_call_operand.vmem [shape: f32[64,16], index: 3, kind: input, shape index: {}]   ;;  %s2781_s4 = inlined_call_operand.vmem [shape: f32[1,16], index: 4, kind: input, shape index: {}]   ;;  %s2782_s5 = inlined_call_operand.vmem [shape: f32[256,16], index: 5, kind: output, shape index: {}]  }
   0x1 LB: > { %s1586_s19 = sadd.s32 4294967295, %s1866_s18   ;;  %p1590_p0 = scmp.ge.s32.totalorder %s1866_s18, 1  ;;  %s1866_s18 = sphi %s1907_s18, %s15_s18  }
   0x2   : > { %p188_p1 = scmp.lt.s32.totalorder %s1866_s18, 3 }
   0x4   : > { %p189_p2 = pnand %p1590_p0, %p188_p1 }
   0x5   : > { %s1591_s20 = sshll.u32 (!%p189_p2), %s1586_s19, 4 }
   0x6   : > { %192 = sbr.rel (%p189_p2) target bundleno = 811 (0x32b), region = 40  ;;  %p217_p3 = scmp.lt.s32.totalorder (!%p189_p2), %s1591_s20, 31 }
   0xb   : > { %v1868_v0 = vmov 0   ;;  %s2784_s20 = smov (!%p217_p3, %s1591_s20), 31  ;;  %v1869_v19 = vmov 1   ;;  %v1870_v35 = vmov 2   ;;  %v244_v57 = vlaneseq }
   0xc   : > { %1784 = vset.pattern.permute.xlu2 %v1868_v0  ;;  %1783 = vset.pattern.permute.xlu1 %v1868_v0  ;;  %s1592_s21 = sshll.u32 %s2784_s20, 3  ;;  %v1871_v60 = vmov 3  }
   0xd   : > { %1782 = vset.pattern.permute.xlu0 %v1868_v0  ;;  %s1923_s24 = scalar_lea.vmem %s2777_s0, %s1592_s21  ;;  %v2037_v62 = vand.u32 127, %v244_v57 }
   0xe   : > { %v1926_v1 = vld [vmem:[%s1923_s24 + $0x20] sm:$0xff]  ;;  %v1929_v2 = vld [vmem:[%s1923_s24 + $0x10] sm:$0xff]  ;;  %v1938_v4 = vld [vmem:[%s1923_s24 + $0x28] sm:$0xff] }
   0xf   : > { %v1932_v3 = vld [vmem:[%s1923_s24] sm:$0xff]  ;;  %259 = vperm.xlu2 %1784, %v1926_v1   ;;  %253 = vperm.xlu1 %1783, %v1929_v2   ;;  %v1941_v5 = vld [vmem:[%s1923_s24 + $0x18] sm:$0xff]  ;;  %v1944_v6 = vld [vmem:[%s1923_s24 + $0x8] sm:$0xff]  ;;  %v362_v20 = vadd.s32 16, %v1926_v1  ;;  %v360_v21 = vadd.s32 16, %v1929_v2  ;;  %v363_v25 = vadd.s32 16, %v1938_v4 }
  0x10   : > { %247 = vperm.xlu0 %1782, %v1932_v3   ;;  %v1950_v7 = vld [vmem:[%s1923_s24 + $0x40] sm:$0xff]  ;;  %v1953_v8 = vld [vmem:[%s1923_s24 + $0x38] sm:$0xff]  ;;  %v1956_v9 = vld [vmem:[%s1923_s24 + $0x30] sm:$0xff]  ;;  %v359_v16 = vadd.s32 16, %v1944_v6  ;;  %v358_v18 = vadd.s32 16, %v1932_v3  ;;  %v361_v22 = vadd.s32 16, %v1941_v5 }
  0x11   : > { %v1962_v10 = vld [vmem:[%s1923_s24 + $0x58] sm:$0xff]  ;;  %v1965_v11 = vld [vmem:[%s1923_s24 + $0x50] sm:$0xff]  ;;  %v1968_v12 = vld [vmem:[%s1923_s24 + $0x48] sm:$0xff]  ;;  %v364_v23 = vadd.s32 16, %v1956_v9  ;;  %v365_v24 = vadd.s32 16, %v1953_v8  ;;  %v366_v28 = vadd.s32 16, %v1950_v7 }
  0x12   : > { %v1974_v13 = vld [vmem:[%s1923_s24 + $0x70] sm:$0xff]  ;;  %v1977_v14 = vld [vmem:[%s1923_s24 + $0x68] sm:$0xff]  ;;  %v1980_v15 = vld [vmem:[%s1923_s24 + $0x60] sm:$0xff]  ;;  %v367_v26 = vadd.s32 16, %v1968_v12  ;;  %v368_v27 = vadd.s32 16, %v1965_v11  ;;  %v369_v31 = vadd.s32 16, %v1962_v10 }
  0x13   : > { %v1987_v17 = vld [vmem:[%s1923_s24 + $0x78] sm:$0xff]  ;;  %v370_v29 = vadd.s32 16, %v1980_v15  ;;  %v371_v30 = vadd.s32 16, %v1977_v14  ;;  %v372_v33 = vadd.s32 16, %v1974_v13  ;;  %v486_v34 = vadd.s32 32, %v1932_v3 }
  0x14   : > { %v373_v32 = vadd.s32 16, %v1987_v17  ;;  %v488_v36 = vadd.s32 32, %v1929_v2  ;;  %v491_v37 = vadd.s32 32, %v1938_v4  ;;  %v487_v38 = vadd.s32 32, %v1944_v6 }
  0x15   : > { %v490_v40 = vadd.s32 32, %v1926_v1  ;;  %v494_v41 = vadd.s32 32, %v1950_v7  ;;  %v489_v42 = vadd.s32 32, %v1941_v5  ;;  %v493_v44 = vadd.s32 32, %v1953_v8 }
  0x16   : > { %v497_v45 = vadd.s32 32, %v1962_v10  ;;  %v492_v46 = vadd.s32 32, %v1956_v9  ;;  %v496_v48 = vadd.s32 32, %v1965_v11  ;;  %v500_v49 = vadd.s32 32, %v1974_v13 }
  0x17   : > { %262 = vperm.xlu2 %1784, %v1938_v4   ;;  %256 = vperm.xlu1 %1783, %v1941_v5   ;;  %v495_v50 = vadd.s32 32, %v1968_v12  ;;  %v499_v54 = vadd.s32 32, %v1977_v14  ;;  %v498_v55 = vadd.s32 32, %v1980_v15  ;;  %v615_v56 = vadd.s32 48, %v1944_v6 }
  0x18   : > { %250 = vperm.xlu0 %1782, %v1944_v6   ;;  %v501_v63 = vadd.s32 32, %v1987_v17  ;;  %v614_v0 = vadd.s32 48, %v1932_v3  ;;  %v624_v57 = vadd.s32 48, %v1965_v11 }
  0x1f   : > { %271 = vperm.xlu2 %1784, %v1950_v7   ;;  %268 = vperm.xlu1 %1783, %v1953_v8  }
  0x20   : > { %265 = vperm.xlu0 %1782, %v1956_v9  }
  0x27   : > { %280 = vperm.xlu2 %1784, %v1962_v10   ;;  %277 = vperm.xlu1 %1783, %v1965_v11  }
  0x28   : > { %274 = vperm.xlu0 %1782, %v1968_v12  }
  0x2f   : > { %289 = vperm.xlu2 %1784, %v1974_v13   ;;  %286 = vperm.xlu1 %1783, %v1977_v14  }
  0x30   : > { %283 = vperm.xlu0 %1782, %v1980_v15  }
  0x37   : > { %1786 = vset.pattern.permute.xlu2 %v1869_v19  ;;  %1785 = vset.pattern.permute.xlu1 %v1869_v19 }
  0x38   : > { %292 = vperm.xlu0 %1782, %v1987_v17   ;;  %378 = vperm.xlu2 %1786, %v359_v16   ;;  %v620_v16 = vadd.s32 48, %v1956_v9  ;;  %v623_v9 = vadd.s32 48, %v1968_v12 }
  0x39   : > { %375 = vperm.xlu1 %1785, %v358_v18  }
  0x40   : > { %1787 = vset.pattern.permute.xlu0 %v1869_v19  ;;  %387 = vperm.xlu2 %1786, %v362_v20   ;;  %v1872_v19 = vmov 0.0  }
  0x41   : > { %381 = vperm.xlu0 %1787, %v360_v21   ;;  %384 = vperm.xlu1 %1785, %v361_v22  }
  0x48   : > { %393 = vperm.xlu2 %1786, %v364_v23  }
  0x49   : > { %396 = vperm.xlu0 %1787, %v365_v24   ;;  %390 = vperm.xlu1 %1785, %v363_v25   ;;  %v617_v25 = vadd.s32 48, %v1941_v5 }
  0x50   : > { %402 = vperm.xlu2 %1786, %v367_v26   ;;  %v616_v26 = vadd.s32 48, %v1929_v2 }
  0x51   : > { %405 = vperm.xlu0 %1787, %v368_v27   ;;  %399 = vperm.xlu1 %1785, %v366_v28  }
  0x58   : > { %411 = vperm.xlu2 %1786, %v370_v29  }
  0x59   : > { %414 = vperm.xlu0 %1787, %v371_v30   ;;  %408 = vperm.xlu1 %1785, %v369_v31  }
  0x60   : > { %420 = vperm.xlu2 %1786, %v373_v32  }
  0x61   : > { %1788 = vset.pattern.permute.xlu0 %v1870_v35  ;;  %417 = vperm.xlu1 %1785, %v372_v33   ;;  %v619_v33 = vadd.s32 48, %v1938_v4 }
  0x62   : > { %503 = vperm.xlu0 %1788, %v486_v34   ;;  %v626_v34 = vadd.s32 48, %v1980_v15 }
  0x68   : > { %1790 = vset.pattern.permute.xlu2 %v1870_v35 }
  0x69   : > { %1789 = vset.pattern.permute.xlu1 %v1870_v35  ;;  %v2009_v39 = vpop.permute.xlu2 %259  ;;  %509 = vperm.xlu2 %1790, %v488_v36   ;;  %v618_v35 = vadd.s32 48, %v1926_v1 }
  0x6a   : > { %518 = vperm.xlu0 %1788, %v491_v37   ;;  %506 = vperm.xlu1 %1789, %v487_v38   ;;  %vm298_vm2 = vcmp.eq.s32.totalorder %v2009_v39, %v2037_v62 }
  0x6b   : > { %v1599_v30 = vsel %vm298_vm2, 1.0, %v1872_v19 }
  0x71   : > { %v2014_v43 = vpop.permute.xlu2 %262  ;;  %515 = vperm.xlu2 %1790, %v490_v40  }
  0x72   : > { %527 = vperm.xlu0 %1788, %v494_v41   ;;  %512 = vperm.xlu1 %1789, %v489_v42   ;;  %v622_v41 = vadd.s32 48, %v1950_v7  ;;  %v629_v42 = vadd.s32 48, %v1987_v17 }
  0x79   : > { %v2019_v47 = vpop.permute.xlu2 %271  ;;  %524 = vperm.xlu2 %1790, %v493_v44   ;;  %v621_v44 = vadd.s32 48, %v1953_v8 }
  0x7a   : > { %536 = vperm.xlu0 %1788, %v497_v45   ;;  %521 = vperm.xlu1 %1789, %v492_v46  }
  0x81   : > { %v2024_v51 = vpop.permute.xlu2 %280  ;;  %v2026_v52 = vpop.permute.xlu1 %253  ;;  %533 = vperm.xlu2 %1790, %v496_v48  }
  0x82   : > { %545 = vperm.xlu0 %1788, %v500_v49   ;;  %530 = vperm.xlu1 %1789, %v495_v50   ;;  %v2028_v53 = vpop.permute.xlu0 %247  ;;  %vm296_vm11 = vcmp.eq.s32.totalorder %v2026_v52, %v2037_v62 }
  0x83   : > { %vm294_vm7 = vcmp.eq.s32.totalorder %v2028_v53, %v2037_v62 }
  0x84   : > { %v1595_v49 = vsel %vm294_vm7, 1.0, %v1872_v19 }
  0x89   : > { %v2033_v58 = vpop.permute.xlu2 %289  ;;  %v2035_v59 = vpop.permute.xlu1 %256  ;;  %542 = vperm.xlu2 %1790, %v499_v54  }
  0x8a   : > { %1792 = vset.pattern.permute.xlu0 %v1871_v60  ;;  %539 = vperm.xlu1 %1789, %v498_v55   ;;  %v251_v61 = vpop.permute.xlu0 %250  ;;  %vm297_vm12 = vcmp.eq.s32.totalorder %v2035_v59, %v2037_v62 }
  0x8b   : > { %634 = vperm.xlu0 %1792, %v615_v56   ;;  %vm295_vm0 = vcmp.eq.s32.totalorder %v251_v61, %v2037_v62  ;;  %v625_v56 = vadd.s32 48, %v1962_v10  ;;  %v1598_v52 = vsel %vm297_vm12, 1.0, %v1872_v19 }
  0x8c   : > { %v1596_v20 = vsel %vm295_vm0, 1.0, %v1872_v19 }
  0x91   : > { %v2043_v18 = vpop.permute.xlu1 %268  ;;  %1791 = vset.pattern.permute.xlu2 %v1871_v60 }
  0x92   : > { %548 = vperm.xlu1 %1789, %v501_v63   ;;  %v379_v21 = vpop.permute.xlu2 %378  ;;  %v266_v22 = vpop.permute.xlu0 %265  ;;  %631 = vperm.xlu2 %1791, %v614_v0   ;;  %vm301_vm2 = vcmp.eq.s32.totalorder %v2043_v18, %v2037_v62 }
  0x93   : > { %vm423_vm1 = vcmp.eq.s32.totalorder %v379_v21, %v2037_v62  ;;  %649 = vperm.xlu0 %1792, %v620_v16   ;;  %vm300_vm4 = vcmp.eq.s32.totalorder %v266_v22, %v2037_v62  ;;  %v1873_v16 = vmov 4   ;;  %v1597_v21 = vsel %vm296_vm11, 1.0, %v1872_v19 }
  0x94   : > { %v1612_v23 = vsel %vm423_vm1, 1.0, %v1872_v19  ;;  %v1601_v37 = vsel %vm300_vm4, 1.0, %v1872_v19  ;;  %vm299_vm1 = vcmp.eq.s32.totalorder %v2014_v43, %v2037_v62  ;;  %v1874_v43 = vmov 6  }
  0x95   : > { %v2048_v24 = vadd.f32 %v1612_v23, %v1596_v20  ;;  %v1602_v18 = vsel %vm301_vm2, 1.0, %v1872_v19  ;;  %vm305_vm11 = vcmp.eq.s32.totalorder %v2024_v51, %v2037_v62 }
  0x99   : > { %v2055_v27 = vpop.permute.xlu1 %277 }
  0x9a   : > { %1793 = vset.pattern.permute.xlu1 %v1871_v60  ;;  %v388_v28 = vpop.permute.xlu2 %387  ;;  %v275_v29 = vpop.permute.xlu0 %274  ;;  %640 = vperm.xlu2 %1791, %v617_v25   ;;  %v751_v60 = vadd.s32 64, %v1968_v12  ;;  %vm304_vm7 = vcmp.eq.s32.totalorder %v2055_v27, %v2037_v62 }
  0x9b   : > { %vm426_vm3 = vcmp.eq.s32.totalorder %v388_v28, %v2037_v62  ;;  %658 = vperm.xlu0 %1792, %v623_v9   ;;  %637 = vperm.xlu1 %1793, %v616_v26   ;;  %vm303_vm6 = vcmp.eq.s32.totalorder %v275_v29, %v2037_v62  ;;  %v628_v28 = vadd.s32 48, %v1974_v13  ;;  %v627_v29 = vadd.s32 48, %v1977_v14 }
  0x9c   : > { %v1615_v31 = vsel %vm426_vm3, 1.0, %v1872_v19  ;;  %v1604_v45 = vsel %vm303_vm6, 1.0, %v1872_v19  ;;  %vm302_vm6 = vcmp.eq.s32.totalorder %v2019_v47, %v2037_v62 }
  0x9d   : > { %v2060_v32 = vadd.f32 %v1615_v31, %v1599_v30  ;;  %v1005_v30 = vadd.s32 96, %v1953_v8 }
  0xa1   : > { %v2066_v36 = vpop.permute.xlu1 %286 }
  0xa2   : > { %v394_v38 = vpop.permute.xlu2 %393  ;;  %v284_v39 = vpop.permute.xlu0 %283  ;;  %646 = vperm.xlu2 %1791, %v619_v33   ;;  %vm307_vm12 = vcmp.eq.s32.totalorder %v2066_v36, %v2037_v62 }
  0xa3   : > { %vm428_vm5 = vcmp.eq.s32.totalorder %v394_v38, %v2037_v62  ;;  %667 = vperm.xlu0 %1792, %v626_v34   ;;  %643 = vperm.xlu1 %1793, %v618_v35   ;;  %vm306_vm10 = vcmp.eq.s32.totalorder %v284_v39, %v2037_v62 }
  0xa4   : > { %v1617_v40 = vsel %vm428_vm5, 1.0, %v1872_v19  ;;  %v1607_v61 = vsel %vm306_vm10, 1.0, %v1872_v19 }
  0xa5   : > { %v2071_v4 = vadd.f32 %v1617_v40, %v1601_v37  ;;  %v1600_v37 = vsel %vm299_vm1, 1.0, %v1872_v19 }
  0xaa   : > { %v403_v46 = vpop.permute.xlu2 %402  ;;  %v293_v48 = vpop.permute.xlu0 %292  ;;  %655 = vperm.xlu2 %1791, %v622_v41  }
  0xab   : > { %vm431_vm8 = vcmp.eq.s32.totalorder %v403_v46, %v2037_v62  ;;  %676 = vperm.xlu0 %1792, %v629_v42   ;;  %652 = vperm.xlu1 %1793, %v621_v44   ;;  %v376_v50 = vpop.permute.xlu1 %375  ;;  %vm309_vm0 = vcmp.eq.s32.totalorder %v293_v48, %v2037_v62  ;;  %v877_v44 = vadd.s32 80, %v1953_v8  ;;  %v1006_v46 = vadd.s32 96, %v1950_v7 }
  0xac   : > { %v1620_v54 = vsel %vm431_vm8, 1.0, %v1872_v19  ;;  %vm422_vm9 = vcmp.eq.s32.totalorder %v376_v50, %v2037_v62  ;;  %v1610_v31 = vsel %vm309_vm0, 1.0, %v1872_v19  ;;  %v1875_v48 = vmov 5  }
  0xad   : > { %v2084_v17 = vadd.f32 %v1620_v54, %v1604_v45  ;;  %v1611_v53 = vsel %vm422_vm9, 1.0, %v1872_v19  ;;  %v749_v45 = vadd.s32 64, %v1953_v8  ;;  %v1603_v54 = vsel %vm302_vm6, 1.0, %v1872_v19 }
  0xae   : > { %v2087_v55 = vadd.f32 %v1611_v53, %v1595_v49  ;;  %v1605_v53 = vsel %vm304_vm7, 1.0, %v1872_v19  ;;  %vm308_vm0 = vcmp.eq.s32.totalorder %v2033_v58, %v2037_v62 }
  0xb2   : > { %v412_v63 = vpop.permute.xlu2 %411  ;;  %664 = vperm.xlu2 %1791, %v625_v56  }
  0xb3   : > { %vm434_vm13 = vcmp.eq.s32.totalorder %v412_v63, %v2037_v62  ;;  %v382_v0 = vpop.permute.xlu0 %381  ;;  %1800 = vset.pattern.permute.xlu0 %v1873_v16  ;;  %661 = vperm.xlu1 %1793, %v624_v57   ;;  %v385_v20 = vpop.permute.xlu1 %384 }
  0xb4   : > { %v1623_v22 = vsel %vm434_vm13, 1.0, %v1872_v19  ;;  %vm424_vm14 = vcmp.eq.s32.totalorder %v382_v0, %v2037_v62  ;;  %vm425_vm15 = vcmp.eq.s32.totalorder %v385_v20, %v2037_v62  ;;  %786 = vperm.xlu0 %1800, %v751_v60   ;;  %v750_v0 = vadd.s32 64, %v1950_v7 }
  0xb5   : > { %v2105_v59 = vadd.f32 %v1623_v22, %v1607_v61  ;;  %v1613_v23 = vsel %vm424_vm14, 1.0, %v1872_v19  ;;  %v1614_v25 = vsel %vm425_vm15, 1.0, %v1872_v19  ;;  %v1007_v20 = vadd.s32 96, %v1968_v12 }
  0xb6   : > { %v472_v9 = vadd.f32 %v1613_v23, %v1597_v21  ;;  %v2109_v26 = vadd.f32 %v1614_v25, %v1598_v52  ;;  %v1133_v21 = vadd.s32 112, %v1953_v8  ;;  %v1606_v23 = vsel %vm305_vm11, 1.0, %v1872_v19 }
  0xb7   : > { %v1608_v8 = vsel %vm307_vm12, 1.0, %v1872_v19 }
  0xba   : > { %v421_v33 = vpop.permute.xlu2 %420  ;;  %673 = vperm.xlu2 %1791, %v628_v28  }
  0xbb   : > { %vm437_vm3 = vcmp.eq.s32.totalorder %v421_v33, %v2037_v62  ;;  %v397_v34 = vpop.permute.xlu0 %396  ;;  %670 = vperm.xlu1 %1793, %v627_v29   ;;  %v391_v35 = vpop.permute.xlu1 %390  ;;  %v742_v33 = vadd.s32 64, %v1932_v3 }
  0xbc   : > { %v1626_v14 = vsel %vm437_vm3, 1.0, %v1872_v19  ;;  %vm429_vm4 = vcmp.eq.s32.totalorder %v397_v34, %v2037_v62  ;;  %vm427_vm5 = vcmp.eq.s32.totalorder %v391_v35, %v2037_v62  ;;  %1801 = vset.pattern.permute.xlu0 %v1874_v43  ;;  %v1001_v34 = vadd.s32 96, %v1941_v5 }
  0xbd   : > { %v2127_v38 = vadd.f32 %v1626_v14, %v1610_v31  ;;  %v1618_v39 = vsel %vm429_vm4, 1.0, %v1872_v19  ;;  %v1616_v40 = vsel %vm427_vm5, 1.0, %v1872_v19  ;;  %1036 = vperm.xlu0 %1801, %v1005_v30   ;;  %v878_v35 = vadd.s32 80, %v1950_v7 }
  0xbe   : > { %v2131_v41 = vadd.f32 %v1618_v39, %v1602_v18  ;;  %v2133_v42 = vadd.f32 %v1616_v40, %v1600_v37  ;;  %v1609_v39 = vsel %vm308_vm0, 1.0, %v1872_v19 }
  0xc2   : > { %1795 = vset.pattern.permute.xlu2 %v1875_v48 }
  0xc3   : > { %v406_v49 = vpop.permute.xlu0 %405  ;;  %1794 = vset.pattern.permute.xlu1 %v1873_v16  ;;  %v400_v50 = vpop.permute.xlu1 %399  ;;  %908 = vperm.xlu2 %1795, %v877_v44  }
  0xc4   : > { %vm432_vm8 = vcmp.eq.s32.totalorder %v406_v49, %v2037_v62  ;;  %vm430_vm9 = vcmp.eq.s32.totalorder %v400_v50, %v2037_v62  ;;  %v510_v47 = vpop.permute.xlu2 %509  ;;  %780 = vperm.xlu1 %1794, %v749_v45   ;;  %v1134_v49 = vadd.s32 112, %v1950_v7  ;;  %v880_v50 = vadd.s32 80, %v1965_v11 }
  0xc5   : > { %v1621_v27 = vsel %vm432_vm8, 1.0, %v1872_v19  ;;  %v1619_v56 = vsel %vm430_vm9, 1.0, %v1872_v19  ;;  %vm552_vm10 = vcmp.eq.s32.totalorder %v510_v47, %v2037_v62  ;;  %1039 = vperm.xlu0 %1801, %v1006_v46  }
  0xc6   : > { %v2151_v57 = vadd.f32 %v1621_v27, %v1605_v53  ;;  %v2153_v60 = vadd.f32 %v1619_v56, %v1603_v54  ;;  %v1629_v61 = vsel %vm552_vm10, 1.0, %v1872_v19  ;;  %v870_v54 = vadd.s32 80, %v1932_v3 }
  0xc7   : > { %v2156_v63 = vadd.f32 %v1629_v61, %v472_v9  ;;  %v1876_v9 = vmov 7  }
  0xcb   : > { %v415_v22 = vpop.permute.xlu0 %414  ;;  %v409_v52 = vpop.permute.xlu1 %408  ;;  %1797 = vset.pattern.permute.xlu2 %v1873_v16 }
  0xcc   : > { %vm435_vm13 = vcmp.eq.s32.totalorder %v415_v22, %v2037_v62  ;;  %vm433_vm14 = vcmp.eq.s32.totalorder %v409_v52, %v2037_v62  ;;  %v516_v25 = vpop.permute.xlu2 %515  ;;  %1796 = vset.pattern.permute.xlu1 %v1876_v9  ;;  %783 = vperm.xlu2 %1797, %v750_v0   ;;  %v998_v22 = vadd.s32 96, %v1932_v3 }
  0xcd   : > { %v1624_v51 = vsel %vm435_vm13, 1.0, %v1872_v19  ;;  %v1622_v36 = vsel %vm433_vm14, 1.0, %v1872_v19  ;;  %vm554_vm15 = vcmp.eq.s32.totalorder %v516_v25, %v2037_v62  ;;  %1042 = vperm.xlu0 %1801, %v1007_v20   ;;  %1164 = vperm.xlu1 %1796, %v1133_v21   ;;  %v874_v20 = vadd.s32 80, %v1926_v1 }
  0xce   : > { %v483_v28 = vadd.f32 %v1624_v51, %v1608_v8  ;;  %v2174_v29 = vadd.f32 %v1622_v36, %v1606_v23  ;;  %v1631_v30 = vsel %vm554_vm15, 1.0, %v1872_v19  ;;  %v879_v21 = vadd.s32 80, %v1968_v12 }
  0xcf   : > { %v2178_v31 = vadd.f32 %v1631_v30, %v2060_v32  ;;  %v1136_v30 = vadd.s32 112, %v1965_v11 }
  0xd3   : > { %v418_v37 = vpop.permute.xlu1 %417 }
  0xd4   : > { %vm436_vm1 = vcmp.eq.s32.totalorder %v418_v37, %v2037_v62  ;;  %v525_v14 = vpop.permute.xlu2 %524  ;;  %v504_v18 = vpop.permute.xlu0 %503  ;;  %759 = vperm.xlu2 %1797, %v742_v33  }
  0xd5   : > { %v1625_v32 = vsel %vm436_vm1, 1.0, %v1872_v19  ;;  %vm557_vm2 = vcmp.eq.s32.totalorder %v525_v14, %v2037_v62  ;;  %vm550_vm3 = vcmp.eq.s32.totalorder %v504_v18, %v2037_v62  ;;  %1024 = vperm.xlu0 %1801, %v1001_v34   ;;  %1798 = vset.pattern.permute.xlu1 %v1875_v48 }
  0xd6   : > { %v2191_v58 = vadd.f32 %v1625_v32, %v1609_v39  ;;  %v1634_v40 = vsel %vm557_vm2, 1.0, %v1872_v19  ;;  %v1627_v44 = vsel %vm550_vm3, 1.0, %v1872_v19  ;;  %911 = vperm.xlu1 %1798, %v878_v35   ;;  %v743_v35 = vadd.s32 64, %v1944_v6 }
  0xd7   : > { %v2196_v45 = vadd.f32 %v1634_v40, %v2131_v41  ;;  %v598_v46 = vadd.f32 %v1627_v44, %v2087_v55  ;;  %v1130_v32 = vadd.s32 112, %v1926_v1 }
  0xdc   : > { %v534_v47 = vpop.permute.xlu2 %533  ;;  %v519_v53 = vpop.permute.xlu0 %518  ;;  %1799 = vset.pattern.permute.xlu2 %v1876_v9 }
  0xdd   : > { %vm560_vm4 = vcmp.eq.s32.totalorder %v534_v47, %v2037_v62  ;;  %vm555_vm5 = vcmp.eq.s32.totalorder %v519_v53, %v2037_v62  ;;  %v507_v27 = vpop.permute.xlu1 %506  ;;  %1822 = vset.pattern.permute.xlu0 %v1875_v48  ;;  %1167 = vperm.xlu2 %1799, %v1134_v49  }
  0xde   : > { %v1637_v55 = vsel %vm560_vm4, 1.0, %v1872_v19  ;;  %v1632_v7 = vsel %vm555_vm5, 1.0, %v1872_v19  ;;  %vm551_vm6 = vcmp.eq.s32.totalorder %v507_v27, %v2037_v62  ;;  %917 = vperm.xlu0 %1822, %v880_v50   ;;  %887 = vperm.xlu1 %1798, %v870_v54   ;;  %v871_v50 = vadd.s32 80, %v1944_v6 }
  0xdf   : > { %v2210_v41 = vadd.f32 %v1637_v55, %v2151_v57  ;;  %v2213_v56 = vadd.f32 %v1632_v7, %v2133_v42  ;;  %v1628_v61 = vsel %vm551_vm6, 1.0, %v1872_v19  ;;  %v745_v27 = vadd.s32 64, %v1941_v5 }
  0xe0   : > { %v2217_v0 = vadd.f32 %v1628_v61, %v2048_v24  ;;  %v752_v5 = vadd.s32 64, %v1965_v11 }
  0xe4   : > { %v543_v52 = vpop.permute.xlu2 %542  ;;  %v528_v23 = vpop.permute.xlu0 %527 }
  0xe5   : > { %vm563_vm7 = vcmp.eq.s32.totalorder %v543_v52, %v2037_v62  ;;  %vm558_vm8 = vcmp.eq.s32.totalorder %v528_v23, %v2037_v62  ;;  %v513_v57 = vpop.permute.xlu1 %512  ;;  %1803 = vset.pattern.permute.xlu2 %v1875_v48  ;;  %v1269_v23 = vld [vmem:[%s2778_s1 + $0x78] sm:$0xff] }
  0xe6   : > { %v1640_v42 = vsel %vm563_vm7, 1.0, %v1872_v19  ;;  %v1635_v24 = vsel %vm558_vm8, 1.0, %v1872_v19  ;;  %vm553_vm9 = vcmp.eq.s32.totalorder %v513_v57, %v2037_v62  ;;  %899 = vperm.xlu0 %1822, %v874_v20   ;;  %1802 = vset.pattern.permute.xlu1 %v1874_v43 }
  0xe7   : > { %v2229_v25 = vadd.f32 %v1640_v42, %v483_v28  ;;  %v2232_v8 = vadd.f32 %v1635_v24, %v2153_v60  ;;  %v1630_v51 = vsel %vm553_vm9, 1.0, %v1872_v19  ;;  %914 = vperm.xlu2 %1803, %v879_v21   ;;  %1015 = vperm.xlu1 %1802, %v998_v22   ;;  %v1126_v60 = vadd.s32 112, %v1932_v3 }
  0xe8   : > { %v601_v36 = vadd.f32 %v1630_v51, %v2109_v26  ;;  %1741 = vmatpush.msra.mxu2 %v1269_v23  ;;  %1274 = vmatpush.msra.mxu0 %v1269_v23  ;;  %v744_v51 = vadd.s32 64, %v1929_v2 }
  0xec   : > { %v537_v33 = vpop.permute.xlu0 %536  ;;  %v632_v34 = vpop.permute.xlu2 %631 }
  0xed   : > { %vm561_vm10 = vcmp.eq.s32.totalorder %v537_v33, %v2037_v62  ;;  %v522_v37 = vpop.permute.xlu1 %521  ;;  %vm678_vm11 = vcmp.eq.s32.totalorder %v632_v34, %v2037_v62  ;;  %v1127_v33 = vadd.s32 112, %v1944_v6  ;;  %v1267_v34 = vld [vmem:[%s2778_s1 + $0x68] sm:$0xff] }
  0xee   : > { %v1638_v28 = vsel %vm561_vm10, 1.0, %v1872_v19  ;;  %vm556_vm12 = vcmp.eq.s32.totalorder %v522_v37, %v2037_v62  ;;  %v1643_v14 = vsel %vm678_vm11, 1.0, %v1872_v19  ;;  %1827 = vset.pattern.permute.xlu0 %v1876_v9 }
  0xef   : > { %v2246_v26 = vadd.f32 %v1638_v28, %v2174_v29  ;;  %v1633_v18 = vsel %vm556_vm12, 1.0, %v1872_v19  ;;  %v2249_v39 = vadd.f32 %v1643_v14, %v598_v46  ;;  %1805 = vset.pattern.permute.xlu2 %v1873_v16  ;;  %1173 = vperm.xlu0 %1827, %v1136_v30   ;;  %v1135_v46 = vadd.s32 112, %v1968_v12 }
  0xf0   : > { %v604_v3 = vadd.f32 %v1633_v18, %v2071_v4  ;;  %1804 = vset.pattern.permute.xlu1 %v1876_v9  ;;  %762 = vperm.xlu2 %1805, %v743_v35   ;;  %v1266_v35 = vld [vmem:[%s2778_s1 + $0x60] sm:$0xff] }
  0xf1   : > { %1143 = vperm.xlu1 %1804, %v1126_v60  }
  0xf4   : > { %v546_v40 = vpop.permute.xlu0 %545  ;;  %v641_v44 = vpop.permute.xlu2 %640 }
  0xf5   : > { %vm564_vm13 = vcmp.eq.s32.totalorder %v546_v40, %v2037_v62  ;;  %v531_v29 = vpop.permute.xlu1 %530  ;;  %vm681_vm14 = vcmp.eq.s32.totalorder %v641_v44, %v2037_v62  ;;  %v872_v40 = vadd.s32 80, %v1929_v2  ;;  %v1008_v44 = vadd.s32 96, %v1965_v11  ;;  %v1261_v11 = vld [vmem:[%s2778_s1 + $0x38] sm:$0xff] }
  0xf6   : > { %v1641_v49 = vsel %vm564_vm13, 1.0, %v1872_v19  ;;  %vm559_vm15 = vcmp.eq.s32.totalorder %v531_v29, %v2037_v62  ;;  %v1646_v4 = vsel %vm681_vm14, 1.0, %v1872_v19  ;;  %v1262_v29 = vld [vmem:[%s2778_s1 + $0x40] sm:$0xff] }
  0xf7   : > { %v2263_v54 = vadd.f32 %v1641_v49, %v2191_v58  ;;  %v1636_v1 = vsel %vm559_vm15, 1.0, %v1872_v19  ;;  %v2266_v47 = vadd.f32 %v1646_v4, %v601_v36  ;;  %1155 = vperm.xlu0 %1827, %v1130_v32   ;;  %v1268_v36 = vld [vmem:[%s2778_s1 + $0x70] sm:$0xff] }
  0xf8   : > { %v2269_v53 = vadd.f32 %v1636_v1, %v2084_v17  ;;  %1807 = vset.pattern.permute.xlu2 %v1876_v9  ;;  %v999_v17 = vadd.s32 96, %v1944_v6  ;;  %1742 = vmatpush.msra.mxu2 %v1268_v36  ;;  %v1265_v6 = vld [vmem:[%s2778_s1 + $0x58] sm:$0xff] }
  0xf9   : > { %1806 = vset.pattern.permute.xlu1 %v1875_v48  ;;  %1170 = vperm.xlu2 %1807, %v1135_v46  }
  0xfa   : > { %890 = vperm.xlu1 %1806, %v871_v50   ;;  %1275 = vmatpush.msra.mxu0 %v1268_v36 }
  0xfb   : > { %1743 = vmatpush.msra.mxu2 %v1267_v34 }
  0xfc   : > { %v647_v12 = vpop.permute.xlu2 %646  ;;  %1276 = vmatpush.msra.mxu0 %v1267_v34  ;;  %v1851_v34 = vld [vmem:[%s1923_s24 + $0x18] sm:$0xff] }
  0xfd   : > { %v540_v55 = vpop.permute.xlu1 %539  ;;  %vm683_vm0 = vcmp.eq.s32.totalorder %v647_v12, %v2037_v62  ;;  %v635_v58 = vpop.permute.xlu0 %634  ;;  %1744 = vmatpush.msra.mxu2 %v1266_v35 }
  0xfe   : > { %vm562_vm1 = vcmp.eq.s32.totalorder %v540_v55, %v2037_v62  ;;  %v1648_v7 = vsel %vm683_vm0, 1.0, %v1872_v19  ;;  %vm679_vm2 = vcmp.eq.s32.totalorder %v635_v58, %v2037_v62  ;;  %1277 = vmatpush.msra.mxu0 %v1266_v35  ;;  %v873_v35 = vadd.s32 80, %v1851_v34 }
  0xff   : > { %v1639_v61 = vsel %vm562_vm1, 1.0, %v1872_v19  ;;  %v2281_v20 = vadd.f32 %v1648_v7, %v2213_v56  ;;  %v1644_v21 = vsel %vm679_vm2, 1.0, %v1872_v19  ;;  %1832 = vset.pattern.permute.xlu0 %v1873_v16  ;;  %1745 = vmatpush.msra.mxu2 %v1265_v6  ;;  %v1000_v7 = vadd.s32 96, %v1929_v2 }
 0x100   : > { %v2287_v22 = vadd.f32 %v1639_v61, %v2105_v59  ;;  %v2290_v52 = vadd.f32 %v1644_v21, %v2217_v0  ;;  %768 = vperm.xlu0 %1832, %v745_v27   ;;  %v756_v59 = vadd.s32 64, %v1974_v13  ;;  %1278 = vmatpush.msra.mxu0 %v1265_v6  ;;  %v1260_v27 = vld [vmem:[%s2778_s1 + $0x30] sm:$0xff]  ;;  %v1258_v61 = vld [vmem:[%s2778_s1 + $0x20] sm:$0xff]  ;;  %v1009_v6 = vadd.s32 96, %v1962_v10 }
 0x101   : > { %1809 = vset.pattern.permute.xlu2 %v1874_v43 }
 0x102   : > { %1808 = vset.pattern.permute.xlu1 %v1873_v16  ;;  %1018 = vperm.xlu2 %1809, %v999_v17   ;;  %v753_v17 = vadd.s32 64, %v1962_v10 }
 0x103   : > { %789 = vperm.xlu1 %1808, %v752_v5   ;;  %v1257_v5 = vld [vmem:[%s2778_s1 + $0x18] sm:$0xff] }
 0x104   : > { %v2297_v56 = vpop.permute.xlu2 %655 }
 0x105   : > { %v549_v57 = vpop.permute.xlu1 %548  ;;  %v650_v0 = vpop.permute.xlu0 %649  ;;  %vm686_vm2 = vcmp.eq.s32.totalorder %v2297_v56, %v2037_v62 }
 0x106   : > { %vm565_vm3 = vcmp.eq.s32.totalorder %v549_v57, %v2037_v62  ;;  %vm684_vm4 = vcmp.eq.s32.totalorder %v650_v0, %v2037_v62  ;;  %v1255_v0 = vld [vmem:[%s2778_s1 + $0x8] sm:$0xff] }
 0x107   : > { %v1642_v42 = vsel %vm565_vm3, 1.0, %v1872_v19  ;;  %v1649_v24 = vsel %vm684_vm4, 1.0, %v1872_v19 }
 0x108   : > { %v2309_v30 = vadd.f32 %v1642_v42, %v2127_v38  ;;  %v2311_v13 = vadd.f32 %v1649_v24, %v604_v3  ;;  %801 = vperm.xlu0 %1832, %v756_v59   ;;  %v1264_v3 = vld [vmem:[%s2778_s1 + $0x50] sm:$0xff]  ;;  %v1128_v42 = vadd.s32 112, %v1929_v2  ;;  %v881_v24 = vadd.s32 80, %v1962_v10 }
 0x109   : > { %1746 = vmatpush.msra.mxu2 %v1264_v3  ;;  %1279 = vmatpush.msra.mxu0 %v1264_v3  ;;  %v1256_v59 = vld [vmem:[%s2778_s1 + $0x10] sm:$0xff]  ;;  %v754_v3 = vadd.s32 64, %v1980_v15 }
 0x10a   : > { %1811 = vset.pattern.permute.xlu2 %v1873_v16 }
 0x10b   : > { %1810 = vset.pattern.permute.xlu1 %v1876_v9  ;;  %765 = vperm.xlu2 %1811, %v744_v51   ;;  %v1254_v51 = vld [vmem:[%s2778_s1] sm:$0xff] }
 0x10c   : > { %1146 = vperm.xlu1 %1810, %v1127_v33   ;;  %v665_v38 = vpop.permute.xlu2 %664 }
 0x10d   : > { %vm689_vm5 = vcmp.eq.s32.totalorder %v665_v38, %v2037_v62  ;;  %v2326_v37 = vpop.permute.xlu0 %658  ;;  %v638_v60 = vpop.permute.xlu1 %637 }
 0x10e   : > { %v1654_v28 = vsel %vm689_vm5, 1.0, %v1872_v19  ;;  %vm680_vm6 = vcmp.eq.s32.totalorder %v638_v60, %v2037_v62  ;;  %vm687_vm4 = vcmp.eq.s32.totalorder %v2326_v37, %v2037_v62 }
 0x10f   : > { %v2331_v14 = vadd.f32 %v1654_v28, %v2246_v26  ;;  %v1645_v18 = vsel %vm680_vm6, 1.0, %v1872_v19  ;;  %v1263_v26 = vld [vmem:[%s2778_s1 + $0x48] sm:$0xff] }
 0x110   : > { %v2338_v32 = vadd.f32 %v1645_v18, %v2156_v63  ;;  %1841 = vset.pattern.permute.xlu0 %v1874_v43  ;;  %1747 = vmatpush.msra.mxu2 %v1263_v26 }
 0x111   : > { %1280 = vmatpush.msra.mxu0 %v1263_v26 }
 0x112   : > { %1748 = vmatpush.msra.mxu2 %v1262_v29 }
 0x113   : > { %1813 = vset.pattern.permute.xlu2 %v1875_v48  ;;  %1281 = vmatpush.msra.mxu0 %v1262_v29 }
 0x114   : > { %1812 = vset.pattern.permute.xlu1 %v1874_v43  ;;  %893 = vperm.xlu2 %1813, %v872_v40   ;;  %v674_v63 = vpop.permute.xlu2 %673  ;;  %v1852_v40 = vld [vmem:[%s1923_s24 + $0x58] sm:$0xff] }
 0x115   : > { %1045 = vperm.xlu1 %1812, %v1008_v44   ;;  %vm692_vm7 = vcmp.eq.s32.totalorder %v674_v63, %v2037_v62  ;;  %v668_v46 = vpop.permute.xlu0 %667  ;;  %v644_v49 = vpop.permute.xlu1 %643  ;;  %1749 = vmatpush.msra.mxu2 %v1261_v11  ;;  %v1137_v44 = vadd.s32 112, %v1852_v40  ;;  %v1856_v40 = vld [vmem:[%s1923_s24 + $0x68] sm:$0xff] }
 0x116   : > { %v1657_v4 = vsel %vm692_vm7, 1.0, %v1872_v19  ;;  %vm690_vm8 = vcmp.eq.s32.totalorder %v668_v46, %v2037_v62  ;;  %vm682_vm9 = vcmp.eq.s32.totalorder %v644_v49, %v2037_v62  ;;  %1282 = vmatpush.msra.mxu0 %v1261_v11 }
 0x117   : > { %v2359_v50 = vadd.f32 %v1657_v4, %v2263_v54  ;;  %v1655_v1 = vsel %vm690_vm8, 1.0, %v1872_v19  ;;  %v1647_v12 = vsel %vm682_vm9, 1.0, %v1872_v19  ;;  %1750 = vmatpush.msra.mxu2 %v1260_v27  ;;  %v1259_v54 = vld [vmem:[%s2778_s1 + $0x28] sm:$0xff]  ;;  %v1129_v4 = vadd.s32 112, %v1851_v34 }
 0x118   : > { %v2367_v55 = vadd.f32 %v1655_v1, %v2287_v22  ;;  %v2370_v58 = vadd.f32 %v1647_v12, %v2178_v31  ;;  %1283 = vmatpush.msra.mxu0 %v1260_v27  ;;  %v1853_v1 = vld [vmem:[%s1923_s24 + $0x60] sm:$0xff]  ;;  %v2438_v27 = vld [vmem:[%s1923_s24 + $0x70] sm:$0xff] }
 0x119   : > { %1751 = vmatpush.msra.mxu2 %v1259_v54  ;;  %v882_v12 = vadd.s32 80, %v1853_v1 }
 0x11a   : > { %1284 = vmatpush.msra.mxu0 %v1259_v54 }
 0x11b   : > { %1752 = vmatpush.msra.mxu2 %v1258_v61 }
 0x11c   : > { %1815 = vset.pattern.permute.xlu2 %v1874_v43  ;;  %1285 = vmatpush.msra.mxu0 %v1258_v61 }
 0x11d   : > { %1814 = vset.pattern.permute.xlu1 %v1873_v16  ;;  %1021 = vperm.xlu2 %1815, %v1000_v7   ;;  %v677_v31 = vpop.permute.xlu0 %676  ;;  %v653_v21 = vpop.permute.xlu1 %652  ;;  %v1012_v7 = vadd.s32 96, %v2438_v27 }
 0x11e   : > { %vm693_vm10 = vcmp.eq.s32.totalorder %v677_v31, %v2037_v62  ;;  %792 = vperm.xlu1 %1814, %v753_v17   ;;  %v909_v22 = vpop.permute.xlu2 %908  ;;  %1753 = vmatpush.msra.mxu2 %v1257_v5  ;;  %vm685_vm13 = vcmp.eq.s32.totalorder %v653_v21, %v2037_v62 }
 0x11f   : > { %v1658_v23 = vsel %vm693_vm10, 1.0, %v1872_v19  ;;  %1286 = vmatpush.msra.mxu0 %v1257_v5  ;;  %v1650_v10 = vsel %vm685_vm13, 1.0, %v1872_v19  ;;  %vm941_vm14 = vcmp.eq.s32.totalorder %v909_v22, %v2037_v62  ;;  %1057 = vperm.xlu0 %1841, %v1012_v7   ;;  %v1651_v22 = vsel %vm686_vm2, 1.0, %v1872_v19 }
 0x120   : > { %v2391_v57 = vadd.f32 %v1658_v23, %v2309_v30  ;;  %1754 = vmatpush.msra.mxu2 %v1256_v59  ;;  %v733_v29 = vadd.f32 %v1650_v10, %v2196_v45  ;;  %v1682_v15 = vsel %vm941_vm14, 1.0, %v1872_v19  ;;  %v1010_v23 = vadd.s32 96, %v1853_v1 }
 0x121   : > { %1287 = vmatpush.msra.mxu0 %v1256_v59  ;;  %v734_v59 = vadd.f32 %v1651_v22, %v2232_v8 }
 0x122   : > { %1755 = vmatpush.msra.mxu2 %v1255_v0 }
 0x123   : > { %1288 = vmatpush.msra.mxu0 %v1255_v0  ;;  %v1855_v0 = vld [vmem:[%s1923_s24 + $0x20] sm:$0xff] }
 0x124   : > { %1756 = vmatpush.msra.mxu2 %v1254_v51 }
 0x125   : > { %1817 = vset.pattern.permute.xlu2 %v1876_v9  ;;  %v662_v36 = vpop.permute.xlu1 %661  ;;  %1289 = vmatpush.msra.mxu0 %v1254_v51  ;;  %v1652_v51 = vsel %vm687_vm4, 1.0, %v1872_v19 }
 0x126   : > { %1816 = vset.pattern.permute.xlu1 %v1875_v48  ;;  %vm688_vm11 = vcmp.eq.s32.totalorder %v662_v36, %v2037_v62  ;;  %1149 = vperm.xlu2 %1817, %v1128_v42   ;;  %v2404_v2 = vpop.permute.xlu2 %783  ;;  %v2414_v60 = vpop.permute.xlu0 %786  ;;  %v746_v42 = vadd.s32 64, %v1855_v0 }
 0x127   : > { %v1653_v30 = vsel %vm688_vm11, 1.0, %v1872_v19  ;;  %920 = vperm.xlu1 %1816, %v881_v24   ;;  %vm814_vm3 = vcmp.eq.s32.totalorder %v2404_v2, %v2037_v62  ;;  %vm815_vm6 = vcmp.eq.s32.totalorder %v2414_v60, %v2037_v62  ;;  %1846 = vset.pattern.permute.xlu0 %v1875_v48 }
 0x128   : > { %v2408_v33 = vadd.f32 %v1653_v30, %v2210_v41  ;;  %v1667_v56 = vsel %vm814_vm3, 1.0, %v1872_v19  ;;  %v1668_v30 = vsel %vm815_vm6, 1.0, %v1872_v19 }
 0x129   : > { %v862_v36 = vadd.f32 %v1667_v56, %v734_v59 }
 0x12d   : > { %v671_v38 = vpop.permute.xlu1 %670 }
 0x12e   : > { %vm691_vm12 = vcmp.eq.s32.totalorder %v671_v38, %v2037_v62  ;;  %1819 = vset.pattern.permute.xlu2 %v1875_v48  ;;  %v2418_v41 = vpop.permute.xlu2 %759 }
 0x12f   : > { %v1656_v28 = vsel %vm691_vm12, 1.0, %v1872_v19  ;;  %1818 = vset.pattern.permute.xlu1 %v1874_v43  ;;  %896 = vperm.xlu2 %1819, %v873_v35   ;;  %v1037_v63 = vpop.permute.xlu0 %1036  ;;  %vm806_vm12 = vcmp.eq.s32.totalorder %v2418_v41, %v2037_v62 }
 0x130   : > { %v2421_v18 = vadd.f32 %v1656_v28, %v2229_v25  ;;  %1048 = vperm.xlu1 %1818, %v1009_v6   ;;  %vm1069_vm0 = vcmp.eq.s32.totalorder %v1037_v63, %v2037_v62  ;;  %v735_v6 = vadd.f32 %v1652_v51, %v2269_v53  ;;  %v1138_v63 = vadd.s32 112, %v1853_v1 }
 0x131   : > { %v1698_v45 = vsel %vm1069_vm0, 1.0, %v1872_v19  ;;  %v1659_v7 = vsel %vm806_vm12, 1.0, %v1872_v19 }
 0x132   : > { %v863_v10 = vadd.f32 %v1668_v30, %v735_v6  ;;  %v2507_v30 = vld [vmem:[%s1923_s24 + $0x78] sm:$0xff] }
 0x136   : > { %v781_v26 = vpop.permute.xlu1 %780 }
 0x137   : > { %vm813_vm15 = vcmp.eq.s32.totalorder %v781_v26, %v2037_v62  ;;  %1821 = vset.pattern.permute.xlu2 %v1873_v16  ;;  %v1168_v25 = vpop.permute.xlu2 %1167  ;;  %v1040_v61 = vpop.permute.xlu0 %1039 }
 0x138   : > { %v1666_v11 = vsel %vm813_vm15, 1.0, %v1872_v19  ;;  %1820 = vset.pattern.permute.xlu1 %v1876_v9  ;;  %795 = vperm.xlu2 %1821, %v754_v3   ;;  %vm1070_vm5 = vcmp.eq.s32.totalorder %v1040_v61, %v2037_v62  ;;  %vm1198_vm7 = vcmp.eq.s32.totalorder %v1168_v25, %v2037_v62  ;;  %v1011_v61 = vadd.s32 96, %v1856_v40 }
 0x139   : > { %v861_v46 = vadd.f32 %v1666_v11, %v733_v29  ;;  %1176 = vperm.xlu1 %1820, %v1137_v44   ;;  %v1699_v8 = vsel %vm1070_vm5, 1.0, %v1872_v19  ;;  %v1715_v38 = vsel %vm1198_vm7, 1.0, %v1872_v19  ;;  %v755_v44 = vadd.s32 64, %v1856_v40 }
 0x13b   : > { %v989_v49 = vadd.f32 %v1682_v15, %v861_v46 }
 0x13d   : > { %v1117_v17 = vadd.f32 %v1698_v45, %v989_v49  ;;  %v883_v49 = vadd.s32 80, %v1856_v40 }
 0x13f   : > { %v1165_v54 = vpop.permute.xlu1 %1164  ;;  %v1043_v34 = vpop.permute.xlu0 %1042 }
 0x140   : > { %vm1197_vm1 = vcmp.eq.s32.totalorder %v1165_v54, %v2037_v62  ;;  %1824 = vset.pattern.permute.xlu2 %v1876_v9  ;;  %vm1071_vm10 = vcmp.eq.s32.totalorder %v1043_v34, %v2037_v62  ;;  %v885_v34 = vadd.s32 80, %v2507_v30 }
 0x141   : > { %v1714_v31 = vsel %vm1197_vm1, 1.0, %v1872_v19  ;;  %1823 = vset.pattern.permute.xlu1 %v1875_v48  ;;  %1152 = vperm.xlu2 %1824, %v1129_v4   ;;  %v915_v21 = vpop.permute.xlu2 %914  ;;  %v1700_v25 = vsel %vm1071_vm10, 1.0, %v1872_v19  ;;  %v1002_v4 = vadd.s32 96, %v1855_v0 }
 0x142   : > { %923 = vperm.xlu1 %1823, %v882_v12   ;;  %v1245_v5 = vadd.f32 %v1714_v31, %v1117_v17  ;;  %vm943_vm9 = vcmp.eq.s32.totalorder %v915_v21, %v2037_v62  ;;  %v854_v17 = vadd.f32 %v1659_v7, %v2249_v39  ;;  %v1857_v21 = vld [vmem:[%s1923_s24 + $0x28] sm:$0xff]  ;;  %932 = vperm.xlu0 %1846, %v885_v34   ;;  %v1013_v34 = vadd.s32 96, %v2507_v30 }
 0x143   : > { %v1684_v60 = vsel %vm943_vm9, 1.0, %v1872_v19 }
 0x144   : > { %1311 = vmatmul.f32.vlgmr.msra.gmra.mxu2 %v1245_v5  ;;  %v991_v26 = vadd.f32 %v1684_v60, %v863_v10  ;;  %v747_v5 = vadd.s32 64, %v1857_v21 }
 0x146   : > { %v1119_v11 = vadd.f32 %v1700_v25, %v991_v26 }
 0x147   : > { %v2482_v1 = vpop.permute.xlu0 %1024 }
 0x148   : > { %v912_v24 = vpop.permute.xlu1 %911 }
 0x149   : > { %vm942_vm8 = vcmp.eq.s32.totalorder %v912_v24, %v2037_v62  ;;  %1826 = vset.pattern.permute.xlu2 %v1874_v43  ;;  %v875_v24 = vadd.s32 80, %v1857_v21 }
 0x14a   : > { %v1683_v37 = vsel %vm942_vm8, 1.0, %v1872_v19  ;;  %1825 = vset.pattern.permute.xlu1 %v1873_v16  ;;  %1051 = vperm.xlu2 %1826, %v1010_v23   ;;  %v2467_v2 = vpop.permute.xlu2 %762 }
 0x14b   : > { %v990_v35 = vadd.f32 %v1683_v37, %v862_v36  ;;  %771 = vperm.xlu1 %1825, %v746_v42   ;;  %v1139_v42 = vadd.s32 112, %v1856_v40  ;;  %vm807_vm0 = vcmp.eq.s32.totalorder %v2467_v2, %v2037_v62  ;;  %v884_v37 = vadd.s32 80, %v2438_v27  ;;  %1848 = vset.pattern.permute.xlu0 %v1876_v9 }
 0x14d   : > { %v1118_v28 = vadd.f32 %v1699_v8, %v990_v35  ;;  %v1003_v35 = vadd.s32 96, %v1857_v21 }
 0x14f   : > { %v1246_v3 = vadd.f32 %v1715_v38, %v1118_v28  ;;  %v1660_v38 = vsel %vm807_vm0, 1.0, %v1872_v19 }
 0x150   : > { %v888_v29 = vpop.permute.xlu1 %887  ;;  %v2495_v23 = vpop.permute.xlu0 %917  ;;  %v855_v28 = vadd.f32 %v1660_v38, %v2290_v52 }
 0x151   : > { %1314 = vmatmul.f32.gmra.mxu2 %v1246_v3  ;;  %vm934_vm13 = vcmp.eq.s32.totalorder %v888_v29, %v2037_v62  ;;  %v1131_v29 = vadd.s32 112, %v1857_v21  ;;  %vm944_vm8 = vcmp.eq.s32.totalorder %v2495_v23, %v2037_v62 }
 0x152   : > { %1829 = vset.pattern.permute.xlu2 %v1873_v16  ;;  %v1675_v54 = vsel %vm934_vm13, 1.0, %v1872_v19 }
 0x153   : > { %1828 = vset.pattern.permute.xlu1 %v1876_v9  ;;  %798 = vperm.xlu2 %1829, %v755_v44   ;;  %v1171_v53 = vpop.permute.xlu2 %1170  ;;  %v982_v31 = vadd.f32 %v1675_v54, %v854_v17  ;;  %v2519_v44 = vld [vmem:[%s1923_s24 + $0x30] sm:$0xff]  ;;  %v1685_v54 = vsel %vm944_vm8, 1.0, %v1872_v19  ;;  %s2710_s24 = scalar_lea.vmem %s2782_s5, %s1592_s21 }
 0x154   : > { %vm1199_vm11 = vcmp.eq.s32.totalorder %v1171_v53, %v2037_v62  ;;  %1179 = vperm.xlu1 %1828, %v1138_v63   ;;  %v748_v26 = vadd.s32 64, %v2519_v44 }
 0x155   : > { %v1716_v15 = vsel %vm1199_vm11, 1.0, %v1872_v19 }
 0x156   : > { %v1247_v46 = vadd.f32 %v1716_v15, %v1119_v11 }
 0x158   : > { %v2501_v8 = vpop.permute.xlu0 %899 }
 0x159   : > { %1317 = vmatmul.f32.gmra.mxu2 %v1247_v46  ;;  %v1016_v45 = vpop.permute.xlu1 %1015 }
 0x15a   : > { %vm1062_vm14 = vcmp.eq.s32.totalorder %v1016_v45, %v2037_v62 }
 0x15b   : > { %1831 = vset.pattern.permute.xlu2 %v1875_v48  ;;  %v1691_v41 = vsel %vm1062_vm14, 1.0, %v1872_v19  ;;  %vm1065_vm14 = vcmp.eq.s32.totalorder %v2482_v1, %v2037_v62 }
 0x15c   : > { %1830 = vset.pattern.permute.xlu1 %v1874_v43  ;;  %926 = vperm.xlu2 %1831, %v883_v49   ;;  %v1019_v12 = vpop.permute.xlu2 %1018  ;;  %v1110_v56 = vadd.f32 %v1691_v41, %v982_v31  ;;  %v1140_v41 = vadd.s32 112, %v2438_v27 }
 0x15d   : > { %1027 = vperm.xlu1 %1830, %v1002_v4   ;;  %vm1063_vm2 = vcmp.eq.s32.totalorder %v1019_v12, %v2037_v62 }
 0x15e   : > { %v1692_v40 = vsel %vm1063_vm2, 1.0, %v1872_v19 }
 0x161   : > { %v1174_v10 = vpop.permute.xlu0 %1173 }
 0x162   : > { %vm1200_vm10 = vcmp.eq.s32.totalorder %v1174_v10, %v2037_v62 }
 0x163   : > { %v1144_v22 = vpop.permute.xlu1 %1143 }
 0x164   : > { %vm1190_vm15 = vcmp.eq.s32.totalorder %v1144_v22, %v2037_v62  ;;  %1834 = vset.pattern.permute.xlu2 %v1874_v43 }
 0x165   : > { %v1707_v59 = vsel %vm1190_vm15, 1.0, %v1872_v19  ;;  %1833 = vset.pattern.permute.xlu1 %v1873_v16  ;;  %1054 = vperm.xlu2 %1834, %v1011_v61   ;;  %v766_v39 = vpop.permute.xlu2 %765 }
 0x166   : > { %774 = vperm.xlu1 %1833, %v747_v5   ;;  %v1238_v0 = vadd.f32 %v1707_v59, %v1110_v56  ;;  %vm808_vm3 = vcmp.eq.s32.totalorder %v766_v39, %v2037_v62 }
 0x167   : > { %v1661_v25 = vsel %vm808_vm3, 1.0, %v1872_v19 }
 0x168   : > { %1290 = vmatmul.f32.vlgmr.msra.gmra.mxu0 %v1238_v0  ;;  %v856_v45 = vadd.f32 %v1661_v25, %v2338_v32  ;;  %v876_v32 = vadd.s32 80, %v2519_v44  ;;  %v1004_v0 = vadd.s32 96, %v2519_v44 }
 0x169   : > { %v2537_v4 = vpop.permute.xlu0 %1155 }
 0x16c   : > { %v891_v51 = vpop.permute.xlu1 %890 }
 0x16d   : > { %1836 = vset.pattern.permute.xlu2 %v1876_v9  ;;  %vm935_vm1 = vcmp.eq.s32.totalorder %v891_v51, %v2037_v62 }
 0x16e   : > { %1835 = vset.pattern.permute.xlu1 %v1875_v48  ;;  %1182 = vperm.xlu2 %1836, %v1139_v42   ;;  %v894_v36 = vpop.permute.xlu2 %893  ;;  %v1676_v60 = vsel %vm935_vm1, 1.0, %v1872_v19  ;;  %v757_v42 = vadd.s32 64, %v2507_v30 }
 0x16f   : > { %902 = vperm.xlu1 %1835, %v875_v24   ;;  %v983_v3 = vadd.f32 %v1676_v60, %v855_v28  ;;  %vm936_vm5 = vcmp.eq.s32.totalorder %v894_v36, %v2037_v62 }
 0x170   : > { %v1677_v49 = vsel %vm936_vm5, 1.0, %v1872_v19  ;;  %vm938_vm5 = vcmp.eq.s32.totalorder %v2501_v8, %v2037_v62 }
 0x171   : > { %v1111_v52 = vadd.f32 %v1692_v40, %v983_v3  ;;  %v984_v17 = vadd.f32 %v1677_v49, %v856_v45  ;;  %v1391_v49 = vld [vmem:[%s2780_s3 + $0x20] sm:$0xff]  ;;  %v1390_v45 = vld [vmem:[%s2780_s3 + $0x18] sm:$0xff] }
 0x172   : > { %v769_v39 = vpop.permute.xlu0 %768 }
 0x173   : > { %vm809_vm12 = vcmp.eq.s32.totalorder %v769_v39, %v2037_v62 }
 0x174   : > { %v1662_v51 = vsel %vm809_vm12, 1.0, %v1872_v19 }
 0x175   : > { %v790_v6 = vpop.permute.xlu1 %789 }
 0x176   : > { %1838 = vset.pattern.permute.xlu2 %v1875_v48  ;;  %vm816_vm4 = vcmp.eq.s32.totalorder %v790_v6, %v2037_v62 }
 0x177   : > { %1837 = vset.pattern.permute.xlu1 %v1874_v43  ;;  %929 = vperm.xlu2 %1838, %v884_v37   ;;  %v1022_v2 = vpop.permute.xlu2 %1021  ;;  %v1669_v15 = vsel %vm816_vm4, 1.0, %v1872_v19  ;;  %v857_v37 = vadd.f32 %v1662_v51, %v2266_v47  ;;  %v1141_v47 = vadd.s32 112, %v2507_v30 }
 0x178   : > { %1030 = vperm.xlu1 %1837, %v1003_v35   ;;  %vm1064_vm7 = vcmp.eq.s32.totalorder %v1022_v2, %v2037_v62  ;;  %v864_v12 = vadd.f32 %v1669_v15, %v2408_v33  ;;  %v1717_v33 = vsel %vm1200_vm10, 1.0, %v1872_v19  ;;  %v1132_v35 = vadd.s32 112, %v2519_v44 }
 0x179   : > { %v1693_v7 = vsel %vm1064_vm7, 1.0, %v1872_v19 }
 0x17a   : > { %v1112_v31 = vadd.f32 %v1693_v7, %v984_v17  ;;  %v992_v5 = vadd.f32 %v1685_v54, %v864_v12  ;;  %v1389_v7 = vld [vmem:[%s2780_s3 + $0x10] sm:$0xff]  ;;  %v1679_v17 = vsel %vm938_vm5, 1.0, %v1872_v19 }
 0x17e   : > { %v1147_v63 = vpop.permute.xlu1 %1146 }
 0x17f   : > { %vm1191_vm6 = vcmp.eq.s32.totalorder %v1147_v63, %v2037_v62  ;;  %1840 = vset.pattern.permute.xlu2 %v1873_v16 }
 0x180   : > { %v1708_v53 = vsel %vm1191_vm6, 1.0, %v1872_v19  ;;  %1839 = vset.pattern.permute.xlu1 %v1876_v9  ;;  %777 = vperm.xlu2 %1840, %v748_v26   ;;  %v1150_v11 = vpop.permute.xlu2 %1149 }
 0x181   : > { %1158 = vperm.xlu1 %1839, %v1131_v29   ;;  %v1239_v46 = vadd.f32 %v1708_v53, %v1111_v52  ;;  %vm1192_vm9 = vcmp.eq.s32.totalorder %v1150_v11, %v2037_v62  ;;  %v1394_v53 = vld [vmem:[%s2780_s3 + $0x38] sm:$0xff] }
 0x182   : > { %v1709_v61 = vsel %vm1192_vm9, 1.0, %v1872_v19  ;;  %1757 = vmatpush.msra.mxu3 %v1394_v53  ;;  %1456 = vmatpush.msra.mxu1 %v1394_v53 }
 0x183   : > { %1293 = vmatmul.f32.gmra.mxu0 %v1239_v46  ;;  %v1240_v56 = vadd.f32 %v1709_v61, %v1112_v31  ;;  %v1392_v46 = vld [vmem:[%s2780_s3 + $0x28] sm:$0xff] }
 0x184   : > { %v1388_v61 = vld [vmem:[%s2780_s3 + $0x8] sm:$0xff] }
 0x187   : > { %v1046_v21 = vpop.permute.xlu1 %1045 }
 0x188   : > { %vm1072_vm11 = vcmp.eq.s32.totalorder %v1046_v21, %v2037_v62  ;;  %1843 = vset.pattern.permute.xlu2 %v1876_v9 }
 0x189   : > { %v1701_v22 = vsel %vm1072_vm11, 1.0, %v1872_v19  ;;  %1842 = vset.pattern.permute.xlu1 %v1875_v48  ;;  %1185 = vperm.xlu2 %1843, %v1140_v41   ;;  %v897_v27 = vpop.permute.xlu2 %896 }
 0x18a   : > { %v1120_v23 = vadd.f32 %v1701_v22, %v992_v5  ;;  %905 = vperm.xlu1 %1842, %v876_v32   ;;  %vm937_vm13 = vcmp.eq.s32.totalorder %v897_v27, %v2037_v62  ;;  %v1387_v5 = vld [vmem:[%s2780_s3] sm:$0xff] }
 0x18b   : > { %1296 = vmatmul.f32.gmra.mxu0 %v1240_v56  ;;  %v1678_v36 = vsel %vm937_vm13, 1.0, %v1872_v19 }
 0x18c   : > { %v1248_v59 = vadd.f32 %v1717_v33, %v1120_v23 }
 0x18e   : > { %1320 = vmatmul.f32.gmra.mxu2 %v1248_v59 }
 0x190   : > { %v793_v24 = vpop.permute.xlu1 %792 }
 0x191   : > { %1845 = vset.pattern.permute.xlu2 %v1874_v43  ;;  %v985_v43 = vadd.f32 %v1678_v36, %v857_v37  ;;  %vm817_vm0 = vcmp.eq.s32.totalorder %v793_v24, %v2037_v62 }
 0x192   : > { %1844 = vset.pattern.permute.xlu1 %v1873_v16  ;;  %v2558_v48 = vpop.permute.xlu2 %795  ;;  %1033 = vperm.xlu2 %1845, %v1004_v0   ;;  %v1694_v16 = vsel %vm1065_vm14, 1.0, %v1872_v19  ;;  %vm1194_vm14 = vcmp.eq.s32.totalorder %v2537_v4, %v2037_v62 }
 0x193   : > { %804 = vperm.xlu1 %1844, %v757_v42   ;;  %v1113_v2 = vadd.f32 %v1694_v16, %v985_v43  ;;  %vm818_vm4 = vcmp.eq.s32.totalorder %v2558_v48, %v2037_v62  ;;  %v1711_v43 = vsel %vm1194_vm14, 1.0, %v1872_v19 }
 0x194   : > { %v1671_v54 = vsel %vm818_vm4, 1.0, %v1872_v19  ;;  %vm1399_vm4 = vcmask 523264  }
 0x195   : > { %v866_v21 = vadd.f32 %v1671_v54, %v2367_v55 }
 0x199   : > { %v921_v6 = vpop.permute.xlu1 %920 }
 0x19a   : > { %1060 = vperm.xlu2 %1845, %v1013_v34   ;;  %vm945_vm1 = vcmp.eq.s32.totalorder %v921_v6, %v2037_v62 }
 0x19b   : > { %1847 = vset.pattern.permute.xlu1 %v1876_v9  ;;  %v1153_v38 = vpop.permute.xlu2 %1152  ;;  %v1670_v9 = vsel %vm817_vm0, 1.0, %v1872_v19  ;;  %v1686_v3 = vsel %vm945_vm1, 1.0, %v1872_v19 }
 0x19c   : > { %vm1193_vm15 = vcmp.eq.s32.totalorder %v1153_v38, %v2037_v62  ;;  %1161 = vperm.xlu1 %1847, %v1132_v35   ;;  %v865_v40 = vadd.f32 %v1670_v9, %v2331_v14  ;;  %v1393_v14 = vld [vmem:[%s2780_s3 + $0x30] sm:$0xff]  ;;  %v802_v38 = vpop.permute.xlu0 %801 }
 0x19d   : > { %v1710_v1 = vsel %vm1193_vm15, 1.0, %v1872_v19  ;;  %1758 = vmatpush.msra.mxu3 %v1393_v14  ;;  %1457 = vmatpush.msra.mxu1 %v1393_v14  ;;  %vm820_vm0 = vcmp.eq.s32.totalorder %v802_v38, %v2037_v62 }
 0x19e   : > { %v1241_v60 = vadd.f32 %v1710_v1, %v1113_v2  ;;  %v993_v26 = vadd.f32 %v1686_v3, %v865_v40 }
 0x19f   : > { %1759 = vmatpush.msra.mxu3 %v1392_v46  ;;  %1458 = vmatpush.msra.mxu1 %v1392_v46 }
 0x1a0   : > { %1299 = vmatmul.f32.gmra.mxu0 %v1241_v60 }
 0x1a1   : > { %1760 = vmatpush.msra.mxu3 %v1391_v49  ;;  %1459 = vmatpush.msra.mxu1 %v1391_v49 }
 0x1a2   : > { %v1049_v28 = vpop.permute.xlu1 %1048 }
 0x1a3   : > { %vm1073_vm2 = vcmp.eq.s32.totalorder %v1049_v28, %v2037_v62  ;;  %1761 = vmatpush.msra.mxu3 %v1390_v45  ;;  %1460 = vmatpush.msra.mxu1 %v1390_v45  ;;  %v2645_v28 = vld [vmem:[%s2779_s2] ss:$0 sm:$0xff] }
 0x1a4   : > { %1188 = vperm.xlu1 %1847, %v1141_v47   ;;  %v1052_v10 = vpop.permute.xlu2 %1051  ;;  %v1702_v44 = vsel %vm1073_vm2, 1.0, %v1872_v19  ;;  %v1673_v47 = vsel %vm820_vm0, 1.0, %v1872_v19 }
 0x1a5   : > { %v1121_v30 = vadd.f32 %v1702_v44, %v993_v26  ;;  %1762 = vmatpush.msra.mxu3 %v1389_v7  ;;  %1461 = vmatpush.msra.mxu1 %v1389_v7  ;;  %vm1074_vm8 = vcmp.eq.s32.totalorder %v1052_v10, %v2037_v62  ;;  %v1058_v10 = vpop.permute.xlu0 %1057  ;;  %v868_v44 = vadd.f32 %v1673_v47, %v2359_v50 }
 0x1a6   : > { %v1703_v27 = vsel %vm1074_vm8, 1.0, %v1872_v19  ;;  %vm1076_vm2 = vcmp.eq.s32.totalorder %v1058_v10, %v2037_v62 }
 0x1a7   : > { %1763 = vmatpush.msra.mxu3 %v1388_v61  ;;  %1462 = vmatpush.msra.mxu1 %v1388_v61 }
 0x1a9   : > { %1764 = vmatpush.msra.mxu3 %v1387_v5  ;;  %1463 = vmatpush.msra.mxu1 %v1387_v5 }
 0x1ab   : > { %v1177_v29 = vpop.permute.xlu1 %1176 }
 0x1ac   : > { %vm1201_vm3 = vcmp.eq.s32.totalorder %v1177_v29, %v2037_v62 }
 0x1ad   : > { %v1718_v63 = vsel %vm1201_vm3, 1.0, %v1872_v19  ;;  %v799_v52 = vpop.permute.xlu2 %798 }
 0x1ae   : > { %v1249_v25 = vadd.f32 %v1718_v63, %v1121_v30  ;;  %vm819_vm9 = vcmp.eq.s32.totalorder %v799_v52, %v2037_v62  ;;  %v1705_v30 = vsel %vm1076_vm2, 1.0, %v1872_v19 }
 0x1b0   : > { %1323 = vmatmul.f32.gmra.mxu2 %v1249_v25 }
 0x1b4   : > { %v924_v11 = vpop.permute.xlu1 %923 }
 0x1b5   : > { %vm946_vm6 = vcmp.eq.s32.totalorder %v924_v11, %v2037_v62 }
 0x1b6   : > { %v927_v15 = vpop.permute.xlu2 %926  ;;  %v1687_v32 = vsel %vm946_vm6, 1.0, %v1872_v19 }
 0x1b7   : > { %v994_v22 = vadd.f32 %v1687_v32, %v866_v21  ;;  %vm947_vm10 = vcmp.eq.s32.totalorder %v927_v15, %v2037_v62 }
 0x1b8   : > { %v1688_v0 = vsel %vm947_vm10, 1.0, %v1872_v19 }
 0x1b9   : > { %v1122_v55 = vadd.f32 %v1703_v27, %v994_v22 }
 0x1bd   : > { %v772_v12 = vpop.permute.xlu1 %771 }
 0x1be   : > { %vm810_vm7 = vcmp.eq.s32.totalorder %v772_v12, %v2037_v62 }
 0x1bf   : > { %v1663_v41 = vsel %vm810_vm7, 1.0, %v1872_v19  ;;  %v1055_v8 = vpop.permute.xlu2 %1054 }
 0x1c0   : > { %v858_v31 = vadd.f32 %v1663_v41, %v2370_v58  ;;  %v1672_v58 = vsel %vm819_vm9, 1.0, %v1872_v19  ;;  %vm1075_vm12 = vcmp.eq.s32.totalorder %v1055_v8, %v2037_v62 }
 0x1c1   : > { %v867_v42 = vadd.f32 %v1672_v58, %v2421_v18  ;;  %v1704_v24 = vsel %vm1075_vm12, 1.0, %v1872_v19 }
 0x1c2   : > { %v986_v33 = vadd.f32 %v1679_v17, %v858_v31 }
 0x1c3   : > { %v995_v51 = vadd.f32 %v1688_v0, %v867_v42  ;;  %v933_v0 = vpop.permute.xlu0 %932 }
 0x1c5   : > { %v1123_v37 = vadd.f32 %v1704_v24, %v995_v51 }
 0x1c6   : > { %v1180_v56 = vpop.permute.xlu1 %1179 }
 0x1c7   : > { %vm1202_vm11 = vcmp.eq.s32.totalorder %v1180_v56, %v2037_v62  ;;  %v2629_v48 = vpop.f32.mrf.mxu2 }
 0x1c8   : > { %v1719_v23 = vsel %vm1202_vm11, 1.0, %v1872_v19  ;;  %v1183_v59 = vpop.permute.xlu2 %1182 }
 0x1c9   : > { %v1250_v39 = vadd.f32 %v1719_v23, %v1122_v55  ;;  %vm1203_vm13 = vcmp.eq.s32.totalorder %v1183_v59, %v2037_v62 }
 0x1ca   : > { %v1720_v36 = vsel %vm1203_vm13, 1.0, %v1872_v19 }
 0x1cb   : > { %1326 = vmatmul.f32.gmra.mxu2 %v1250_v39  ;;  %v1251_v16 = vadd.f32 %v1720_v36, %v1123_v37 }
 0x1cf   : > { %v1028_v34 = vpop.permute.xlu1 %1027 }
 0x1d0   : > { %vm1066_vm15 = vcmp.eq.s32.totalorder %v1028_v34, %v2037_v62 }
 0x1d1   : > { %v1695_v18 = vsel %vm1066_vm15, 1.0, %v1872_v19  ;;  %v930_v35 = vpop.permute.xlu2 %929 }
 0x1d2   : > { %v1114_v6 = vadd.f32 %v1695_v18, %v986_v33  ;;  %vm948_vm1 = vcmp.eq.s32.totalorder %v930_v35, %v2037_v62 }
 0x1d3   : > { %1329 = vmatmul.f32.gmra.mxu2 %v1251_v16  ;;  %v1689_v3 = vsel %vm948_vm1, 1.0, %v1872_v19  ;;  %vm949_vm1 = vcmp.eq.s32.totalorder %v933_v0, %v2037_v62 }
 0x1d4   : > { %v2637_v2 = vpop.f32.mrf.mxu2  ;;  %v1242_v1 = vadd.f32 %v1711_v43, %v1114_v6  ;;  %v996_v29 = vadd.f32 %v1689_v3, %v868_v44  ;;  %v1690_v35 = vsel %vm949_vm1, 1.0, %v1872_v19 }
 0x1d6   : > { %1302 = vmatmul.f32.gmra.mxu0 %v1242_v1  ;;  %v1124_v53 = vadd.f32 %v1705_v30, %v996_v29 }
 0x1d8   : > { %v775_v4 = vpop.permute.xlu1 %774 }
 0x1d9   : > { %vm811_vm7 = vcmp.eq.s32.totalorder %v775_v4, %v2037_v62 }
 0x1da   : > { %v778_v60 = vpop.permute.xlu2 %777  ;;  %v1664_v12 = vsel %vm811_vm7, 1.0, %v1872_v19 }
 0x1db   : > { %v859_v54 = vadd.f32 %v1664_v12, %v2281_v20  ;;  %vm812_vm11 = vcmp.eq.s32.totalorder %v778_v60, %v2037_v62 }
 0x1dc   : > { %v1318_v9 = vpop.f32.mrf.mxu2  ;;  %v1665_v56 = vsel %vm812_vm11, 1.0, %v1872_v19 }
 0x1dd   : > { %v1319_v40 = vadd.f32 %v2645_v28, %v1318_v9  ;;  %v860_v59 = vadd.f32 %v1665_v56, %v2311_v13 }
 0x1df   : > { %v1364_v26 = vmul.f32 0.01, %v1319_v40  ;;  %vm1348_vm3 = vcmp.gt.f32.partialorder %v1319_v40, 0.0 }
 0x1e1   : > { %v903_v63 = vpop.permute.xlu1 %902  ;;  %v1380_v52 = vsel %vm1348_vm3, %v1319_v40, %v1364_v26 }
 0x1e2   : > { %1732 = vmatmul.msk.f32.vlgmr.msra.gmra.mxu3 %vm1399_vm4, %v1380_v52  ;;  %vm939_vm8 = vcmp.eq.s32.totalorder %v903_v63, %v2037_v62 }
 0x1e3   : > { %v1186_v25 = vpop.permute.xlu2 %1185  ;;  %v1680_v7 = vsel %vm939_vm8, 1.0, %v1872_v19 }
 0x1e4   : > { %vm1204_vm5 = vcmp.eq.s32.totalorder %v1186_v25, %v2037_v62  ;;  %v987_v41 = vadd.f32 %v1680_v7, %v859_v54 }
 0x1e5   : > { %v1721_v11 = vsel %vm1204_vm5, 1.0, %v1872_v19  ;;  %v1291_v14 = vpop.f32.mrf.mxu0 }
 0x1e6   : > { %v1292_v50 = vadd.f32 %v2645_v28, %v1291_v14  ;;  %v1252_v15 = vadd.f32 %v1721_v11, %v1124_v53 }
 0x1e8   : > { %v1355_v46 = vmul.f32 0.01, %v1292_v50  ;;  %1332 = vmatmul.f32.gmra.mxu2 %v1252_v15  ;;  %vm1339_vm6 = vcmp.gt.f32.partialorder %v1292_v50, 0.0 }
 0x1ea   : > { %v1031_v49 = vpop.permute.xlu1 %1030  ;;  %v1371_v45 = vsel %vm1339_vm6, %v1292_v50, %v1355_v46 }
 0x1eb   : > { %1723 = vmatmul.msk.f32.vlgmr.msra.gmra.mxu1 %vm1399_vm4, %v1371_v45  ;;  %vm1067_vm9 = vcmp.eq.s32.totalorder %v1031_v49, %v2037_v62 }
 0x1ec   : > { %v1696_v17 = vsel %vm1067_vm9, 1.0, %v1872_v19  ;;  %v1034_v55 = vpop.permute.xlu2 %1033 }
 0x1ed   : > { %v1115_v61 = vadd.f32 %v1696_v17, %v987_v41  ;;  %vm1068_vm14 = vcmp.eq.s32.totalorder %v1034_v55, %v2037_v62  ;;  %v2703_v17 = vld [vmem:[%s2781_s4] ss:$0 sm:$0xff] }
 0x1ee   : > { %v1697_v51 = vsel %vm1068_vm14, 1.0, %v1872_v19 }
 0x1f3   : > { %v1159_v8 = vpop.permute.xlu1 %1158 }
 0x1f4   : > { %vm1195_vm10 = vcmp.eq.s32.totalorder %v1159_v8, %v2037_v62  ;;  %v1061_v34 = vpop.permute.xlu2 %1060 }
 0x1f5   : > { %v1712_v32 = vsel %vm1195_vm10, 1.0, %v1872_v19  ;;  %vm1077_vm3 = vcmp.eq.s32.totalorder %v1061_v34, %v2037_v62 }
 0x1f6   : > { %v1243_v31 = vadd.f32 %v1712_v32, %v1115_v61  ;;  %v1706_v60 = vsel %vm1077_vm3, 1.0, %v1872_v19 }
 0x1f8   : > { %1305 = vmatmul.f32.gmra.mxu0 %v1243_v31 }
 0x1fc   : > { %v906_v21 = vpop.permute.xlu1 %905 }
 0x1fd   : > { %vm940_vm13 = vcmp.eq.s32.totalorder %v906_v21, %v2037_v62 }
 0x1fe   : > { %v1681_v58 = vsel %vm940_vm13, 1.0, %v1872_v19 }
 0x1ff   : > { %v988_v42 = vadd.f32 %v1681_v58, %v860_v59 }
 0x200   : > { %v1294_v5 = vpop.f32.mrf.mxu0 }
 0x201   : > { %v1295_v33 = vadd.f32 %v2645_v28, %v1294_v5  ;;  %v1116_v43 = vadd.f32 %v1697_v51, %v988_v42 }
 0x203   : > { %v1356_v22 = vmul.f32 0.01, %v1295_v33  ;;  %vm1340_vm12 = vcmp.gt.f32.partialorder %v1295_v33, 0.0 }
 0x205   : > { %v805_v20 = vpop.permute.xlu1 %804  ;;  %v1372_v27 = vsel %vm1340_vm12, %v1295_v33, %v1356_v22  ;;  %vm1513_vm12 = vcmask 130048  }
 0x206   : > { %1724 = vmatmul.msk.f32.gmra.mxu1 %vm1399_vm4, %v1372_v27  ;;  %vm821_vm15 = vcmp.eq.s32.totalorder %v805_v20, %v2037_v62 }
 0x207   : > { %v1674_v36 = vsel %vm821_vm15, 1.0, %v1872_v19 }
 0x208   : > { %v1297_v23 = vpop.f32.mrf.mxu0  ;;  %v869_v18 = vadd.f32 %v1674_v36, %v2391_v57 }
 0x209   : > { %v1298_v39 = vadd.f32 %v2645_v28, %v1297_v23 }
 0x20a   : > { %v997_v4 = vadd.f32 %v1690_v35, %v869_v18 }
 0x20b   : > { %v1357_v24 = vmul.f32 0.01, %v1298_v39  ;;  %vm1341_vm0 = vcmp.gt.f32.partialorder %v1298_v39, 0.0 }
 0x20c   : > { %v1125_v9 = vadd.f32 %v1706_v60, %v997_v4 }
 0x20d   : > { %v1373_v37 = vsel %vm1341_vm0, %v1298_v39, %v1357_v24  ;;  %v1313_v24 = vadd.f32 %v2645_v28, %v2629_v48 }
 0x20e   : > { %1725 = vmatmul.msk.f32.gmra.mxu1 %vm1399_vm4, %v1373_v37  ;;  %v1162_v13 = vpop.permute.xlu1 %1161 }
 0x20f   : > { %vm1196_vm2 = vcmp.eq.s32.totalorder %v1162_v13, %v2037_v62  ;;  %v1362_v36 = vmul.f32 0.01, %v1313_v24  ;;  %vm1346_vm0 = vcmp.gt.f32.partialorder %v1313_v24, 0.0  ;;  %v1316_v13 = vadd.f32 %v2645_v28, %v2637_v2 }
 0x210   : > { %v1713_v16 = vsel %vm1196_vm2, 1.0, %v1872_v19 }
 0x211   : > { %v1321_v6 = vpop.f32.mrf.mxu2  ;;  %v1244_v38 = vadd.f32 %v1713_v16, %v1116_v43  ;;  %v1378_v43 = vsel %vm1346_vm0, %v1313_v24, %v1362_v36  ;;  %v1363_v16 = vmul.f32 0.01, %v1316_v13  ;;  %vm1347_vm2 = vcmp.gt.f32.partialorder %v1316_v13, 0.0 }
 0x212   : > { %v1322_v1 = vadd.f32 %v2645_v28, %v1321_v6 }
 0x213   : > { %1308 = vmatmul.f32.gmra.mxu0 %v1244_v38 }
 0x214   : > { %v1365_v47 = vmul.f32 0.01, %v1322_v1  ;;  %vm1349_vm5 = vcmp.gt.f32.partialorder %v1322_v1, 0.0 }
 0x216   : > { %v1189_v10 = vpop.permute.xlu1 %1188  ;;  %v1381_v57 = vsel %vm1349_vm5, %v1322_v1, %v1365_v47  ;;  %v1379_v1 = vsel %vm1347_vm2, %v1316_v13, %v1363_v16 }
 0x217   : > { %vm1205_vm6 = vcmp.eq.s32.totalorder %v1189_v10, %v2037_v62  ;;  %1733 = vmatmul.msk.f32.gmra.mxu3 %vm1399_vm4, %v1381_v57 }
 0x218   : > { %v1722_v3 = vsel %vm1205_vm6, 1.0, %v1872_v19 }
 0x219   : > { %v1253_v40 = vadd.f32 %v1722_v3, %v1125_v9 }
 0x21b   : > { %1335 = vmatmul.f32.gmra.mxu2 %v1253_v40 }
 0x21d   : > { %v1300_v44 = vpop.f32.mrf.mxu0 }
 0x21e   : > { %v1301_v26 = vadd.f32 %v2645_v28, %v1300_v44 }
 0x220   : > { %v1358_v29 = vmul.f32 0.01, %v1301_v26  ;;  %vm1342_vm7 = vcmp.gt.f32.partialorder %v1301_v26, 0.0 }
 0x222   : > { %v1374_v30 = vsel %vm1342_vm7, %v1301_v26, %v1358_v29 }
 0x223   : > { %1726 = vmatmul.msk.f32.gmra.mxu1 %vm1399_vm4, %v1374_v30 }
 0x233   : > { %v1324_v63 = vpop.f32.mrf.mxu2 }
 0x234   : > { %v1325_v52 = vadd.f32 %v2645_v28, %v1324_v63 }
 0x236   : > { %v1366_v25 = vmul.f32 0.01, %v1325_v52  ;;  %vm1350_vm8 = vcmp.gt.f32.partialorder %v1325_v52, 0.0 }
 0x238   : > { %v1382_v62 = vsel %vm1350_vm8, %v1325_v52, %v1366_v25 }
 0x239   : > { %1734 = vmatmul.msk.f32.gmra.mxu3 %vm1399_vm4, %v1382_v62 }
 0x24e   : > { %v1327_v53 = vpop.f32.mrf.mxu2 }
 0x24f   : > { %v1328_v19 = vadd.f32 %v2645_v28, %v1327_v53 }
 0x251   : > { %v1367_v11 = vmul.f32 0.01, %v1328_v19  ;;  %vm1351_vm9 = vcmp.gt.f32.partialorder %v1328_v19, 0.0 }
 0x253   : > { %v1303_v14 = vpop.f32.mrf.mxu0  ;;  %v1383_v50 = vsel %vm1351_vm9, %v1328_v19, %v1367_v11 }
 0x254   : > { %v1304_v15 = vadd.f32 %v2645_v28, %v1303_v14  ;;  %1735 = vmatmul.msk.f32.gmra.mxu3 %vm1399_vm4, %v1383_v50 }
 0x256   : > { %v1359_v46 = vmul.f32 0.01, %v1304_v15  ;;  %v1330_v49 = vpop.f32.mrf.mxu2  ;;  %vm1343_vm10 = vcmp.gt.f32.partialorder %v1304_v15, 0.0 }
 0x257   : > { %v1331_v45 = vadd.f32 %v2645_v28, %v1330_v49 }
 0x258   : > { %v1375_v12 = vsel %vm1343_vm10, %v1304_v15, %v1359_v46 }
 0x259   : > { %v1368_v7 = vmul.f32 0.01, %v1331_v45  ;;  %1727 = vmatmul.msk.f32.gmra.mxu1 %vm1399_vm4, %v1375_v12  ;;  %vm1352_vm11 = vcmp.gt.f32.partialorder %v1331_v45, 0.0 }
 0x25b   : > { %v1384_v54 = vsel %vm1352_vm11, %v1331_v45, %v1368_v7 }
 0x25c   : > { %1736 = vmatmul.msk.f32.gmra.mxu3 %vm1399_vm4, %v1384_v54 }
 0x265   : > { %v1492_v41 = vpop.f32.mrf.mxu3 }
 0x266   : > { %v1493_v8 = vadd.f32 %v2703_v17, %v1492_v41 }
 0x268   : > { %1523 = vst.msk [vmem:[%s2710_s24 + $0x48] sm:$0xff] %vm1513_vm12, %v1493_v8  ;;  %v1465_v61 = vpop.f32.mrf.mxu1 }
 0x269   : > { %v1466_v32 = vadd.f32 %v2703_v17, %v1465_v61 }
 0x26b   : > { %1514 = vst.msk [vmem:[%s2710_s24] sm:$0xff] %vm1513_vm12, %v1466_v32  ;;  %v1333_v31 = vpop.f32.mrf.mxu2 }
 0x26c   : > { %v1334_v21 = vadd.f32 %v2645_v28, %v1333_v31 }
 0x26e   : > { %v1369_v5 = vmul.f32 0.01, %v1334_v21  ;;  %vm1353_vm13 = vcmp.gt.f32.partialorder %v1334_v21, 0.0 }
 0x270   : > { %v1385_v33 = vsel %vm1353_vm13, %v1334_v21, %v1369_v5 }
 0x271   : > { %1737 = vmatmul.msk.f32.gmra.mxu3 %vm1399_vm4, %v1385_v33 }
 0x275   : > { %v1306_v22 = vpop.f32.mrf.mxu0 }
 0x276   : > { %v1307_v20 = vadd.f32 %v2645_v28, %v1306_v22 }
 0x278   : > { %v1360_v27 = vmul.f32 0.01, %v1307_v20  ;;  %vm1344_vm14 = vcmp.gt.f32.partialorder %v1307_v20, 0.0 }
 0x27a   : > { %v1376_v56 = vsel %vm1344_vm14, %v1307_v20, %v1360_v27 }
 0x27b   : > { %1728 = vmatmul.msk.f32.gmra.mxu1 %vm1399_vm4, %v1376_v56 }
 0x283   : > { %v1468_v55 = vpop.f32.mrf.mxu1 }
 0x284   : > { %v1469_v58 = vadd.f32 %v2703_v17, %v1468_v55 }
 0x286   : > { %1515 = vst.msk [vmem:[%s2710_s24 + $0x8] sm:$0xff] %vm1513_vm12, %v1469_v58 }
 0x28b   : > { %v1471_v23 = vpop.f32.mrf.mxu1 }
 0x28c   : > { %v1472_v59 = vadd.f32 %v2703_v17, %v1471_v23 }
 0x28e   : > { %1516 = vst.msk [vmem:[%s2710_s24 + $0x10] sm:$0xff] %vm1513_vm12, %v1472_v59 }
 0x290   : > { %v1309_v39 = vpop.f32.mrf.mxu0 }
 0x291   : > { %v1310_v0 = vadd.f32 %v2645_v28, %v1309_v39 }
 0x293   : > { %v1361_v42 = vmul.f32 0.01, %v1310_v0  ;;  %vm1345_vm15 = vcmp.gt.f32.partialorder %v1310_v0, 0.0 }
 0x295   : > { %v1377_v51 = vsel %vm1345_vm15, %v1310_v0, %v1361_v42 }
 0x296   : > { %1729 = vmatmul.msk.f32.gmra.mxu1 %vm1399_vm4, %v1377_v51 }
 0x29a   : > { %v1495_v37 = vpop.f32.mrf.mxu3 }
 0x29b   : > { %v1496_v34 = vadd.f32 %v2703_v17, %v1495_v37 }
 0x29d   : > { %1524 = vst.msk [vmem:[%s2710_s24 + $0x50] sm:$0xff] %vm1513_vm12, %v1496_v34 }
 0x29e   : > { %v1336_v18 = vpop.f32.mrf.mxu2  ;;  %1730 = vmatmul.msk.f32.gmra.mxu1 %vm1399_vm4, %v1378_v43 }
 0x29f   : > { %v1337_v48 = vadd.f32 %v2645_v28, %v1336_v18 }
 0x2a0   : > { %v1474_v35 = vpop.f32.mrf.mxu1 }
 0x2a1   : > { %v1370_v6 = vmul.f32 0.01, %v1337_v48  ;;  %v1475_v38 = vadd.f32 %v2703_v17, %v1474_v35  ;;  %vm1354_vm1 = vcmp.gt.f32.partialorder %v1337_v48, 0.0 }
 0x2a3   : > { %1517 = vst.msk [vmem:[%s2710_s24 + $0x18] sm:$0xff] %vm1513_vm12, %v1475_v38  ;;  %v1386_v2 = vsel %vm1354_vm1, %v1337_v48, %v1370_v6 }
 0x2a4   : > { %1738 = vmatmul.msk.f32.gmra.mxu3 %vm1399_vm4, %v1386_v2 }
 0x2a6   : > { %1731 = vmatmul.msk.f32.gmra.mxu1 %vm1399_vm4, %v1379_v1 }
 0x2bc   : > { %v1498_v28 = vpop.f32.mrf.mxu3 }
 0x2bd   : > { %v1499_v4 = vadd.f32 %v2703_v17, %v1498_v28 }
 0x2bf   : > { %1525 = vst.msk [vmem:[%s2710_s24 + $0x58] sm:$0xff] %vm1513_vm12, %v1499_v4 }
 0x2d6   : > { %v1477_v60 = vpop.f32.mrf.mxu1 }
 0x2d7   : > { %v1478_v47 = vadd.f32 %v2703_v17, %v1477_v60  ;;  %v1501_v10 = vpop.f32.mrf.mxu3 }
 0x2d8   : > { %v1502_v57 = vadd.f32 %v2703_v17, %v1501_v10 }
 0x2d9   : > { %1518 = vst.msk [vmem:[%s2710_s24 + $0x20] sm:$0xff] %vm1513_vm12, %v1478_v47 }
 0x2da   : > { %1526 = vst.msk [vmem:[%s2710_s24 + $0x60] sm:$0xff] %vm1513_vm12, %v1502_v57 }
 0x2df   : > { %v1504_v9 = vpop.f32.mrf.mxu3 }
 0x2e0   : > { %v1505_v3 = vadd.f32 %v2703_v17, %v1504_v9 }
 0x2e2   : > { %1527 = vst.msk [vmem:[%s2710_s24 + $0x68] sm:$0xff] %vm1513_vm12, %v1505_v3 }
 0x2f4   : > { %v1507_v40 = vpop.f32.mrf.mxu3 }
 0x2f5   : > { %v1508_v44 = vadd.f32 %v2703_v17, %v1507_v40 }
 0x2f7   : > { %1528 = vst.msk [vmem:[%s2710_s24 + $0x70] sm:$0xff] %vm1513_vm12, %v1508_v44 }
 0x2f8   : > { %v1480_v26 = vpop.f32.mrf.mxu1 }
 0x2f9   : > { %v1481_v29 = vadd.f32 %v2703_v17, %v1480_v26 }
 0x2fb   : > { %1519 = vst.msk [vmem:[%s2710_s24 + $0x28] sm:$0xff] %vm1513_vm12, %v1481_v29 }
 0x313   : > { %v1483_v30 = vpop.f32.mrf.mxu1 }
 0x314   : > { %v1484_v63 = vadd.f32 %v2703_v17, %v1483_v30 }
 0x316   : > { %1520 = vst.msk [vmem:[%s2710_s24 + $0x30] sm:$0xff] %vm1513_vm12, %v1484_v63 }
 0x31b   : > { %v1486_v52 = vpop.f32.mrf.mxu1 }
 0x31c   : > { %v1487_v25 = vadd.f32 %v2703_v17, %v1486_v52 }
 0x31e   : > { %1521 = vst.msk [vmem:[%s2710_s24 + $0x38] sm:$0xff] %vm1513_vm12, %v1487_v25 }
 0x323   : > { %v1489_v62 = vpop.f32.mrf.mxu1 }
 0x324   : > { %v1490_v53 = vadd.f32 %v2703_v17, %v1489_v62 }
 0x326   : > { %1522 = vst.msk [vmem:[%s2710_s24 + $0x40] sm:$0xff] %vm1513_vm12, %v1490_v53 }
 0x327   : > { %v1510_v19 = vpop.f32.mrf.mxu3 }
 0x328   : > { %v1511_v11 = vadd.f32 %v2703_v17, %v1510_v19 }
 0x32a   : > { %1529 = vst.msk [vmem:[%s2710_s24 + $0x78] sm:$0xff] %vm1513_vm12, %v1511_v11 }
 0x32b PF: > { %s15_s18 = sadd.s32 1, %s1866_s18  }
 0x32c   : > { %p12_p4 = scmp.ge.s32.totalorder %s15_s18, 4  }
 0x32e   :  { %14 = sbr.rel (!%p12_p4) target bundleno = 1 (0x1), region = 70 }

</bundles_post_ra>
